<compile_context>
chip_gen: v5e
topology: v5e:2x2
jax: 0.10.0
libtpu: 0.0.40
codegen_flags: <defaults>
</compile_context>

<pallas_src>
import functools

import numpy as np

import jax
import jax.numpy as jnp
from jax.experimental import pallas as pl
from jax.experimental.pallas import tpu as pltpu


def _round_up(n, m):
    return (n + m - 1) // m * m


# ----------------------------- Pallas kernel ------------------------------ #
def _rgcn_fused_kernel(a_ref, w1_ref, w2_ref, w3_ref, b1_ref, b2_ref, b3_ref,
                       x_ref, o_ref, *, n_rel, compute_dtype):
    """Fused 3-layer hetero RGCN forward.

    a:  (R, N, N)  pre-normalized packed adjacency, one block per relation
    wK: (R, F, F)  per-relation weights of layer K, zero-padded to F x F
    bK: (N, F)     per-dst-type summed biases of layer K (zero-padded)
    x:  (N, F)     packed input features (each type's features start at col 0)
    o:  (N, F)     packed output features
    """

    def hetero_layer(h, w_ref, b_ref, apply_relu):
        hc = h.astype(compute_dtype)
        acc = b_ref[...]                      # cross-relation sum starts at summed bias
        for r in range(n_rel):                # static, unrolled relation loop
            # project first, then aggregate:  A_norm @ (H @ W) == (A_norm @ H) @ W
            m = jnp.dot(hc, w_ref[r].astype(compute_dtype),
                        preferred_element_type=jnp.float32)
            acc = acc + jnp.dot(a_ref[r].astype(compute_dtype),
                                m.astype(compute_dtype),
                                preferred_element_type=jnp.float32)
        return jnp.maximum(acc, 0.0) if apply_relu else acc

    h = x_ref[...]
    h = hetero_layer(h, w1_ref, b1_ref, True)    # conv1 + relu (+ eval-mode dropout)
    h = hetero_layer(h, w2_ref, b2_ref, True)    # conv2 + relu (+ eval-mode dropout)
    o_ref[...] = hetero_layer(h, w3_ref, b3_ref, False)   # conv3


def _rgcn_fused_call(a_stack, w1, w2, w3, b1, b2, b3, x, *, n_rel,
                     compute_dtype=jnp.float32):
    n_pad, f_pad = x.shape
    vmem = pl.BlockSpec(memory_space=pltpu.MemorySpace.VMEM)
    kernel = functools.partial(_rgcn_fused_kernel, n_rel=n_rel,
                               compute_dtype=compute_dtype)
    return pl.pallas_call(
        kernel,
        out_shape=jax.ShapeDtypeStruct((n_pad, f_pad), jnp.float32),
        in_specs=[vmem] * 8,
        out_specs=vmem,
        compiler_params=pltpu.CompilerParams(vmem_limit_bytes=32 * 1024 * 1024),
    )(a_stack, w1, w2, w3, b1, b2, b3, x)


# ------------------------- Packing + forward wrapper ----------------------- #
def rgcn_forward(adjs, feats, params, num_nodes, hid_feats, out_feats,
                 compute_dtype=jnp.float32):
    """adjs: dict (srctype, etype, dsttype) -> dense adjacency (N_dst, N_src)
       feats: dict ntype -> (N, F_in); params: per-layer per-etype W / b."""
    ntypes = list(num_nodes.keys())
    offsets, off = {}, 0
    for nt in ntypes:
        offsets[nt] = off
        off += num_nodes[nt]
    n_total = off
    # pad the packed node axis to 128 -> lane-dense adjacency layout and 128-aligned
    # contraction dims for every MXU matmul
    n_pad = _round_up(max(n_total, 128), 128)

    rels = list(adjs.keys())
    n_rel = len(rels)

    max_feat = max([f.shape[1] for f in feats.values()] + [hid_feats, out_feats])
    f_pad = _round_up(max(max_feat, 128), 128)   # lane-dense feature slab

    # --- pre-normalized packed adjacencies (computed ONCE, shared by all 3 layers)
    a_stack = np.zeros((n_rel, n_pad, n_pad), np.float32)
    for r, (srct, etype, dstt) in enumerate(rels):
        a = np.asarray(adjs[(srct, etype, dstt)], np.float32)
        ns = np.maximum(a.sum(axis=0), 1.0) ** -0.5      # src out-degree norm
        nd = np.maximum(a.sum(axis=1), 1.0) ** -0.5      # dst in-degree norm
        a_norm = nd[:, None] * a * ns[None, :]
        a_stack[r,
                offsets[dstt]:offsets[dstt] + num_nodes[dstt],
                offsets[srct]:offsets[srct] + num_nodes[srct]] = a_norm

    # --- packed input features (each node type's features start at column 0;
    #     wrong-type rows only produce values that A_norm zeroes out)
    x = np.zeros((n_pad, f_pad), np.float32)
    for nt in ntypes:
        f = np.asarray(feats[nt], np.float32)
        x[offsets[nt]:offsets[nt] + num_nodes[nt], :f.shape[1]] = f

    # --- zero-padded per-relation weights + per-dst-type summed biases, per layer
    def pack_layer(wd, bd, f_out):
        w = np.zeros((n_rel, f_pad, f_pad), np.float32)
        b = np.zeros((n_pad, f_pad), np.float32)
        for r, (srct, etype, dstt) in enumerate(rels):
            wr = np.asarray(wd[etype], np.float32)
            w[r, :wr.shape[0], :wr.shape[1]] = wr
            b[offsets[dstt]:offsets[dstt] + num_nodes[dstt], :f_out] += np.broadcast_to(
                np.asarray(bd[etype], np.float32), (num_nodes[dstt], f_out))
        return w, b

    w1, b1 = pack_layer(params["w1"], params["b1"], hid_feats)
    w2, b2 = pack_layer(params["w2"], params["b2"], hid_feats)
    w3, b3 = pack_layer(params["w3"], params["b3"], out_feats)

    out = _rgcn_fused_call(
        jnp.asarray(a_stack), jnp.asarray(w1), jnp.asarray(w2), jnp.asarray(w3),
        jnp.asarray(b1), jnp.asarray(b2), jnp.asarray(b3), jnp.asarray(x),
        n_rel=n_rel, compute_dtype=compute_dtype)

    dst_types = {dstt for (_, _, dstt) in rels}
    return {nt: out[offsets[nt]:offsets[nt] + num_nodes[nt], :out_feats]
            for nt in ntypes if nt in dst_types}


# ----------------------- Pure-JAX reference (sanity) ----------------------- #
def rgcn_reference(adjs, feats, params, hid_feats, out_feats):
    def layer(h_in, wd, bd, relu):
        out = {}
        for (srct, etype, dstt), a in adjs.items():
            if srct not in h_in:
                continue
            ns = jnp.maximum(a.sum(axis=0), 1.0)[:, None] ** -0.5
            nd = jnp.maximum(a.sum(axis=1), 1.0)[:, None] ** -0.5
            y = nd * jnp.dot(jnp.dot(a, ns * h_in[srct]), wd[etype]) + bd[etype]
            out[dstt] = y if dstt not in out else out[dstt] + y
        if relu:
            out = {k: jnp.maximum(v, 0.0) for k, v in out.items()}
        return out

    h = layer(feats, params["w1"], params["b1"], True)
    h = layer(h, params["w2"], params["b2"], True)
    h = layer(h, params["w3"], params["b3"], False)
    return h


# ---------------------------- Param / data setup --------------------------- #
def init_params(key, rel_names, in_feats, hid, out):
    def glorot(k, shape):
        fan_in, fan_out = shape
        lim = (6.0 / (fan_in + fan_out)) ** 0.5
        return jax.random.uniform(k, shape, jnp.float32, -lim, lim)

    params = {"w1": {}, "b1": {}, "w2": {}, "b2": {}, "w3": {}, "b3": {}}
    for i, (srct, etype, dstt) in enumerate(rel_names):
        k1, k2, k3 = jax.random.split(jax.random.fold_in(key, i), 3)
        params["w1"][etype] = glorot(k1, (in_feats[srct], hid))
        params["b1"][etype] = jnp.zeros((1, hid), jnp.float32)
        params["w2"][etype] = glorot(k2, (hid, hid))
        params["b2"][etype] = jnp.zeros((1, hid), jnp.float32)
        params["w3"][etype] = glorot(k3, (hid, out))
        params["b3"][etype] = jnp.zeros((1, out), jnp.float32)
    return params


if __name__ == "__main__":
    key = jax.random.PRNGKey(0)

    # small hetero graph: two node types, three relations
    num_nodes = {"user": 16, "item": 16}
    in_feats = {"user": 8, "item": 12}
    hid_feats, out_feats = 16, 8
    rel_names = [("user", "follows", "user"),
                 ("user", "buys", "item"),
                 ("item", "bought_by", "user")]

    # dense adjacency per relation: (N_dst, N_src), ~30% edge density
    adjs = {}
    for i, (srct, etype, dstt) in enumerate(rel_names):
        k = jax.random.fold_in(key, 100 + i)
        adjs[(srct, etype, dstt)] = jax.random.bernoulli(
            k, 0.3, (num_nodes[dstt], num_nodes[srct])).astype(jnp.float32)

    # node features
    feats = {
        nt: jax.random.normal(jax.random.fold_in(key, 200 + j),
                              (num_nodes[nt], in_feats[nt]), jnp.float32)
        for j, nt in enumerate(num_nodes)
    }

    params = init_params(key, rel_names, in_feats, hid_feats, out_feats)

    h = rgcn_forward(adjs, feats, params, num_nodes, hid_feats, out_feats)
    for v in h.values():
        jax.block_until_ready(v)

    # sanity: output shapes per node type
    assert h["user"].shape == (num_nodes["user"], out_feats)
    assert h["item"].shape == (num_nodes["item"], out_feats)

    # numerical sanity check vs. pure-JAX reference of the same module
    ref = rgcn_reference(adjs, feats, params, hid_feats, out_feats)
    for nt in h:
        assert jnp.allclose(h[nt], ref[nt], rtol=1e-3, atol=1e-3), nt

    print("KERNEL_OK")
</pallas_src>

<mosaic_0001>
module attributes {stable_mosaic.version = 11 : i64} {
  func.func @_rgcn_fused_kernel(%arg0: memref<3x128x128xf32, #tpu.memory_space<vmem>>, %arg1: memref<3x128x128xf32, #tpu.memory_space<vmem>>, %arg2: memref<3x128x128xf32, #tpu.memory_space<vmem>>, %arg3: memref<3x128x128xf32, #tpu.memory_space<vmem>>, %arg4: memref<128x128xf32, #tpu.memory_space<vmem>>, %arg5: memref<128x128xf32, #tpu.memory_space<vmem>>, %arg6: memref<128x128xf32, #tpu.memory_space<vmem>>, %arg7: memref<128x128xf32, #tpu.memory_space<vmem>>, %arg8: memref<128x128xf32, #tpu.memory_space<vmem>>) attributes {dimension_semantics = [], scalar_prefetch = 0 : i64, scratch_operands = 0 : i64, tpu.core_type = #tpu.core_type<tc>} {
    %c0 = arith.constant 0 : index
    %c0_0 = arith.constant 0 : index
    %0 = vector.load %arg7[%c0, %c0_0] : memref<128x128xf32, #tpu.memory_space<vmem>>, vector<128x128xf32>
    %c0_1 = arith.constant 0 : index
    %c0_2 = arith.constant 0 : index
    %1 = vector.load %arg4[%c0_1, %c0_2] : memref<128x128xf32, #tpu.memory_space<vmem>>, vector<128x128xf32>
    %c0_3 = arith.constant 0 : index
    %c0_4 = arith.constant 0 : index
    %c0_5 = arith.constant 0 : index
    %2 = vector.load %arg1[%c0_3, %c0_4, %c0_5] : memref<3x128x128xf32, #tpu.memory_space<vmem>>, vector<1x128x128xf32>
    %3 = vector.shape_cast %2 : vector<1x128x128xf32> to vector<128x128xf32>
    %cst = arith.constant dense<0.000000e+00> : vector<128x128xf32>
    %4 = tpu.matmul %0, %3, %cst {dimension_numbers = #tpu.dot_dimension_numbers<[1], [0], [0], [1], [0, 0, 1, 1], [], []>} : vector<128x128xf32>, vector<128x128xf32>, vector<128x128xf32> -> vector<128x128xf32>
    %c0_6 = arith.constant 0 : index
    %c0_7 = arith.constant 0 : index
    %c0_8 = arith.constant 0 : index
    %5 = vector.load %arg0[%c0_6, %c0_7, %c0_8] : memref<3x128x128xf32, #tpu.memory_space<vmem>>, vector<1x128x128xf32>
    %6 = vector.shape_cast %5 : vector<1x128x128xf32> to vector<128x128xf32>
    %cst_9 = arith.constant dense<0.000000e+00> : vector<128x128xf32>
    %7 = tpu.matmul %6, %4, %cst_9 {dimension_numbers = #tpu.dot_dimension_numbers<[1], [0], [0], [1], [0, 0, 1, 1], [], []>} : vector<128x128xf32>, vector<128x128xf32>, vector<128x128xf32> -> vector<128x128xf32>
    %8 = arith.addf %1, %7 : vector<128x128xf32>
    %c1 = arith.constant 1 : index
    %c0_10 = arith.constant 0 : index
    %c0_11 = arith.constant 0 : index
    %9 = vector.load %arg1[%c1, %c0_10, %c0_11] : memref<3x128x128xf32, #tpu.memory_space<vmem>>, vector<1x128x128xf32>
    %10 = vector.shape_cast %9 : vector<1x128x128xf32> to vector<128x128xf32>
    %cst_12 = arith.constant dense<0.000000e+00> : vector<128x128xf32>
    %11 = tpu.matmul %0, %10, %cst_12 {dimension_numbers = #tpu.dot_dimension_numbers<[1], [0], [0], [1], [0, 0, 1, 1], [], []>} : vector<128x128xf32>, vector<128x128xf32>, vector<128x128xf32> -> vector<128x128xf32>
    %c1_13 = arith.constant 1 : index
    %c0_14 = arith.constant 0 : index
    %c0_15 = arith.constant 0 : index
    %12 = vector.load %arg0[%c1_13, %c0_14, %c0_15] : memref<3x128x128xf32, #tpu.memory_space<vmem>>, vector<1x128x128xf32>
    %13 = vector.shape_cast %12 : vector<1x128x128xf32> to vector<128x128xf32>
    %cst_16 = arith.constant dense<0.000000e+00> : vector<128x128xf32>
    %14 = tpu.matmul %13, %11, %cst_16 {dimension_numbers = #tpu.dot_dimension_numbers<[1], [0], [0], [1], [0, 0, 1, 1], [], []>} : vector<128x128xf32>, vector<128x128xf32>, vector<128x128xf32> -> vector<128x128xf32>
    %15 = arith.addf %8, %14 : vector<128x128xf32>
    %c2 = arith.constant 2 : index
    %c0_17 = arith.constant 0 : index
    %c0_18 = arith.constant 0 : index
    %16 = vector.load %arg1[%c2, %c0_17, %c0_18] : memref<3x128x128xf32, #tpu.memory_space<vmem>>, vector<1x128x128xf32>
    %17 = vector.shape_cast %16 : vector<1x128x128xf32> to vector<128x128xf32>
    %cst_19 = arith.constant dense<0.000000e+00> : vector<128x128xf32>
    %18 = tpu.matmul %0, %17, %cst_19 {dimension_numbers = #tpu.dot_dimension_numbers<[1], [0], [0], [1], [0, 0, 1, 1], [], []>} : vector<128x128xf32>, vector<128x128xf32>, vector<128x128xf32> -> vector<128x128xf32>
    %c2_20 = arith.constant 2 : index
    %c0_21 = arith.constant 0 : index
    %c0_22 = arith.constant 0 : index
    %19 = vector.load %arg0[%c2_20, %c0_21, %c0_22] : memref<3x128x128xf32, #tpu.memory_space<vmem>>, vector<1x128x128xf32>
    %20 = vector.shape_cast %19 : vector<1x128x128xf32> to vector<128x128xf32>
    %cst_23 = arith.constant dense<0.000000e+00> : vector<128x128xf32>
    %21 = tpu.matmul %20, %18, %cst_23 {dimension_numbers = #tpu.dot_dimension_numbers<[1], [0], [0], [1], [0, 0, 1, 1], [], []>} : vector<128x128xf32>, vector<128x128xf32>, vector<128x128xf32> -> vector<128x128xf32>
    %22 = arith.addf %15, %21 : vector<128x128xf32>
    %cst_24 = arith.constant 0.000000e+00 : f32
    %23 = vector.broadcast %cst_24 : f32 to vector<128x128xf32>
    %24 = arith.maximumf %22, %23 : vector<128x128xf32>
    %c0_25 = arith.constant 0 : index
    %c0_26 = arith.constant 0 : index
    %25 = vector.load %arg5[%c0_25, %c0_26] : memref<128x128xf32, #tpu.memory_space<vmem>>, vector<128x128xf32>
    %c0_27 = arith.constant 0 : index
    %c0_28 = arith.constant 0 : index
    %c0_29 = arith.constant 0 : index
    %26 = vector.load %arg2[%c0_27, %c0_28, %c0_29] : memref<3x128x128xf32, #tpu.memory_space<vmem>>, vector<1x128x128xf32>
    %27 = vector.shape_cast %26 : vector<1x128x128xf32> to vector<128x128xf32>
    %cst_30 = arith.constant dense<0.000000e+00> : vector<128x128xf32>
    %28 = tpu.matmul %24, %27, %cst_30 {dimension_numbers = #tpu.dot_dimension_numbers<[1], [0], [0], [1], [0, 0, 1, 1], [], []>} : vector<128x128xf32>, vector<128x128xf32>, vector<128x128xf32> -> vector<128x128xf32>
    %c0_31 = arith.constant 0 : index
    %c0_32 = arith.constant 0 : index
    %c0_33 = arith.constant 0 : index
    %29 = vector.load %arg0[%c0_31, %c0_32, %c0_33] : memref<3x128x128xf32, #tpu.memory_space<vmem>>, vector<1x128x128xf32>
    %30 = vector.shape_cast %29 : vector<1x128x128xf32> to vector<128x128xf32>
    %cst_34 = arith.constant dense<0.000000e+00> : vector<128x128xf32>
    %31 = tpu.matmul %30, %28, %cst_34 {dimension_numbers = #tpu.dot_dimension_numbers<[1], [0], [0], [1], [0, 0, 1, 1], [], []>} : vector<128x128xf32>, vector<128x128xf32>, vector<128x128xf32> -> vector<128x128xf32>
    %32 = arith.addf %25, %31 : vector<128x128xf32>
    %c1_35 = arith.constant 1 : index
    %c0_36 = arith.constant 0 : index
    %c0_37 = arith.constant 0 : index
    %33 = vector.load %arg2[%c1_35, %c0_36, %c0_37] : memref<3x128x128xf32, #tpu.memory_space<vmem>>, vector<1x128x128xf32>
    %34 = vector.shape_cast %33 : vector<1x128x128xf32> to vector<128x128xf32>
    %cst_38 = arith.constant dense<0.000000e+00> : vector<128x128xf32>
    %35 = tpu.matmul %24, %34, %cst_38 {dimension_numbers = #tpu.dot_dimension_numbers<[1], [0], [0], [1], [0, 0, 1, 1], [], []>} : vector<128x128xf32>, vector<128x128xf32>, vector<128x128xf32> -> vector<128x128xf32>
    %c1_39 = arith.constant 1 : index
    %c0_40 = arith.constant 0 : index
    %c0_41 = arith.constant 0 : index
    %36 = vector.load %arg0[%c1_39, %c0_40, %c0_41] : memref<3x128x128xf32, #tpu.memory_space<vmem>>, vector<1x128x128xf32>
    %37 = vector.shape_cast %36 : vector<1x128x128xf32> to vector<128x128xf32>
    %cst_42 = arith.constant dense<0.000000e+00> : vector<128x128xf32>
    %38 = tpu.matmul %37, %35, %cst_42 {dimension_numbers = #tpu.dot_dimension_numbers<[1], [0], [0], [1], [0, 0, 1, 1], [], []>} : vector<128x128xf32>, vector<128x128xf32>, vector<128x128xf32> -> vector<128x128xf32>
    %39 = arith.addf %32, %38 : vector<128x128xf32>
    %c2_43 = arith.constant 2 : index
    %c0_44 = arith.constant 0 : index
    %c0_45 = arith.constant 0 : index
    %40 = vector.load %arg2[%c2_43, %c0_44, %c0_45] : memref<3x128x128xf32, #tpu.memory_space<vmem>>, vector<1x128x128xf32>
    %41 = vector.shape_cast %40 : vector<1x128x128xf32> to vector<128x128xf32>
    %cst_46 = arith.constant dense<0.000000e+00> : vector<128x128xf32>
    %42 = tpu.matmul %24, %41, %cst_46 {dimension_numbers = #tpu.dot_dimension_numbers<[1], [0], [0], [1], [0, 0, 1, 1], [], []>} : vector<128x128xf32>, vector<128x128xf32>, vector<128x128xf32> -> vector<128x128xf32>
    %c2_47 = arith.constant 2 : index
    %c0_48 = arith.constant 0 : index
    %c0_49 = arith.constant 0 : index
    %43 = vector.load %arg0[%c2_47, %c0_48, %c0_49] : memref<3x128x128xf32, #tpu.memory_space<vmem>>, vector<1x128x128xf32>
    %44 = vector.shape_cast %43 : vector<1x128x128xf32> to vector<128x128xf32>
    %cst_50 = arith.constant dense<0.000000e+00> : vector<128x128xf32>
    %45 = tpu.matmul %44, %42, %cst_50 {dimension_numbers = #tpu.dot_dimension_numbers<[1], [0], [0], [1], [0, 0, 1, 1], [], []>} : vector<128x128xf32>, vector<128x128xf32>, vector<128x128xf32> -> vector<128x128xf32>
    %46 = arith.addf %39, %45 : vector<128x128xf32>
    %cst_51 = arith.constant 0.000000e+00 : f32
    %47 = vector.broadcast %cst_51 : f32 to vector<128x128xf32>
    %48 = arith.maximumf %46, %47 : vector<128x128xf32>
    %c0_52 = arith.constant 0 : index
    %c0_53 = arith.constant 0 : index
    %49 = vector.load %arg6[%c0_52, %c0_53] : memref<128x128xf32, #tpu.memory_space<vmem>>, vector<128x128xf32>
    %c0_54 = arith.constant 0 : index
    %c0_55 = arith.constant 0 : index
    %c0_56 = arith.constant 0 : index
    %50 = vector.load %arg3[%c0_54, %c0_55, %c0_56] : memref<3x128x128xf32, #tpu.memory_space<vmem>>, vector<1x128x128xf32>
    %51 = vector.shape_cast %50 : vector<1x128x128xf32> to vector<128x128xf32>
    %cst_57 = arith.constant dense<0.000000e+00> : vector<128x128xf32>
    %52 = tpu.matmul %48, %51, %cst_57 {dimension_numbers = #tpu.dot_dimension_numbers<[1], [0], [0], [1], [0, 0, 1, 1], [], []>} : vector<128x128xf32>, vector<128x128xf32>, vector<128x128xf32> -> vector<128x128xf32>
    %c0_58 = arith.constant 0 : index
    %c0_59 = arith.constant 0 : index
    %c0_60 = arith.constant 0 : index
    %53 = vector.load %arg0[%c0_58, %c0_59, %c0_60] : memref<3x128x128xf32, #tpu.memory_space<vmem>>, vector<1x128x128xf32>
    %54 = vector.shape_cast %53 : vector<1x128x128xf32> to vector<128x128xf32>
    %cst_61 = arith.constant dense<0.000000e+00> : vector<128x128xf32>
    %55 = tpu.matmul %54, %52, %cst_61 {dimension_numbers = #tpu.dot_dimension_numbers<[1], [0], [0], [1], [0, 0, 1, 1], [], []>} : vector<128x128xf32>, vector<128x128xf32>, vector<128x128xf32> -> vector<128x128xf32>
    %56 = arith.addf %49, %55 : vector<128x128xf32>
    %c1_62 = arith.constant 1 : index
    %c0_63 = arith.constant 0 : index
    %c0_64 = arith.constant 0 : index
    %57 = vector.load %arg3[%c1_62, %c0_63, %c0_64] : memref<3x128x128xf32, #tpu.memory_space<vmem>>, vector<1x128x128xf32>
    %58 = vector.shape_cast %57 : vector<1x128x128xf32> to vector<128x128xf32>
    %cst_65 = arith.constant dense<0.000000e+00> : vector<128x128xf32>
    %59 = tpu.matmul %48, %58, %cst_65 {dimension_numbers = #tpu.dot_dimension_numbers<[1], [0], [0], [1], [0, 0, 1, 1], [], []>} : vector<128x128xf32>, vector<128x128xf32>, vector<128x128xf32> -> vector<128x128xf32>
    %c1_66 = arith.constant 1 : index
    %c0_67 = arith.constant 0 : index
    %c0_68 = arith.constant 0 : index
    %60 = vector.load %arg0[%c1_66, %c0_67, %c0_68] : memref<3x128x128xf32, #tpu.memory_space<vmem>>, vector<1x128x128xf32>
    %61 = vector.shape_cast %60 : vector<1x128x128xf32> to vector<128x128xf32>
    %cst_69 = arith.constant dense<0.000000e+00> : vector<128x128xf32>
    %62 = tpu.matmul %61, %59, %cst_69 {dimension_numbers = #tpu.dot_dimension_numbers<[1], [0], [0], [1], [0, 0, 1, 1], [], []>} : vector<128x128xf32>, vector<128x128xf32>, vector<128x128xf32> -> vector<128x128xf32>
    %63 = arith.addf %56, %62 : vector<128x128xf32>
    %c2_70 = arith.constant 2 : index
    %c0_71 = arith.constant 0 : index
    %c0_72 = arith.constant 0 : index
    %64 = vector.load %arg3[%c2_70, %c0_71, %c0_72] : memref<3x128x128xf32, #tpu.memory_space<vmem>>, vector<1x128x128xf32>
    %65 = vector.shape_cast %64 : vector<1x128x128xf32> to vector<128x128xf32>
    %cst_73 = arith.constant dense<0.000000e+00> : vector<128x128xf32>
    %66 = tpu.matmul %48, %65, %cst_73 {dimension_numbers = #tpu.dot_dimension_numbers<[1], [0], [0], [1], [0, 0, 1, 1], [], []>} : vector<128x128xf32>, vector<128x128xf32>, vector<128x128xf32> -> vector<128x128xf32>
    %c2_74 = arith.constant 2 : index
    %c0_75 = arith.constant 0 : index
    %c0_76 = arith.constant 0 : index
    %67 = vector.load %arg0[%c2_74, %c0_75, %c0_76] : memref<3x128x128xf32, #tpu.memory_space<vmem>>, vector<1x128x128xf32>
    %68 = vector.shape_cast %67 : vector<1x128x128xf32> to vector<128x128xf32>
    %cst_77 = arith.constant dense<0.000000e+00> : vector<128x128xf32>
    %69 = tpu.matmul %68, %66, %cst_77 {dimension_numbers = #tpu.dot_dimension_numbers<[1], [0], [0], [1], [0, 0, 1, 1], [], []>} : vector<128x128xf32>, vector<128x128xf32>, vector<128x128xf32> -> vector<128x128xf32>
    %70 = arith.addf %63, %69 : vector<128x128xf32>
    %c0_78 = arith.constant 0 : index
    %c0_79 = arith.constant 0 : index
    %71 = vector.load %arg8[%c0_78, %c0_79] : memref<128x128xf32, #tpu.memory_space<vmem>>, vector<128x128xf32>
    tpu.vector_store %arg8[%c0_78, %c0_79], %70 {strides = array<i32>} : memref<128x128xf32, #tpu.memory_space<vmem>>, vector<128x128xf32>,
    return
  }
}

</mosaic_0001>

<bundles_post_ra>
// kernel: tpu_custom_call.1
= control target key start
LH: loop header
LB: loop body
LE: loop exit
PB: predicated region body
PF: predicated region fallthrough
CT: control target
= control target key end

     0   :  { %13 = vsyncpa [#allocation3], 0  ;;  %s2850_s0 = inlined_call_operand.hbm [shape: f32[3,128,128], index: 0, kind: input, shape index: {}]   ;;  %s2851_s1 = inlined_call_operand.hbm [shape: f32[3,128,128], index: 1, kind: input, shape index: {}]   ;;  %s2852_s2 = inlined_call_operand.hbm [shape: f32[3,128,128], index: 2, kind: input, shape index: {}]   ;;  %s2853_s3 = inlined_call_operand.hbm [shape: f32[3,128,128], index: 3, kind: input, shape index: {}]   ;;  %s2854_s4 = inlined_call_operand.hbm [shape: f32[128,128], index: 4, kind: input, shape index: {}]   ;;  %s2855_s5 = inlined_call_operand.hbm [shape: f32[128,128], index: 5, kind: input, shape index: {}]   ;;  %s2856_s6 = inlined_call_operand.hbm [shape: f32[128,128], index: 6, kind: input, shape index: {}]   ;;  %s2857_s7 = inlined_call_operand.hbm [shape: f32[128,128], index: 7, kind: input, shape index: {}]   ;;  %s2858_s8 = inlined_call_operand.hbm [shape: f32[128,128], index: 8, kind: output, shape index: {}]  }
   0x1   :  { %14 = vsyncpa [#allocation6], 0 }
   0x2   :  { %15 = vsyncpa [#allocation9], 0 }
   0x3   :  { %16 = vsyncpa [#allocation12], 0 }
   0x4   :  { %17 = vsyncpa [#allocation15], 0 }
   0x5   :  { %18 = vsyncpa [#allocation4], 0  ;;  %s36_s29 = sshll.u32 %s2851_s1, 4  ;;  %s2123_s30 = smov [#allocation5]   ;;  %s37_s29 = int_to_ptr.hbm [resolvable:$true] %s36_s29 }
   0x6   :  { %s38_s9 = sshll.u32 %s2123_s30, 4  ;;  %s62_s12 = sshll.u32 %s2853_s3, 4  ;;  %s39_s9 = int_to_ptr.vmem [resolvable:$true] %s38_s9  ;;  %s63_s12 = int_to_ptr.hbm [resolvable:$true] %s62_s12 }
   0x7   :  { %s2124_s13 = smov 128   ;;  %s2125_s14 = smov 8  }
   0x8   :  { %44 = dma.hbm_to_vmem [thread:$0]  %s37_s29, 6144, %s39_s9, [#allocation6], %s2124_s13, %s2124_s13, %s2125_s14  }
   0x9   :  { %s2126_s15 = smov [#allocation8]   ;;  %s88_s1 = sshll.u32 %s2855_s5, 4  ;;  %s89_s1 = int_to_ptr.hbm [resolvable:$true] %s88_s1 }
   0xa   :  { %s64_s16 = sshll.u32 %s2126_s15, 4  ;;  %s23_s20 = sshll.u32 %s2850_s0, 4  ;;  %s65_s16 = int_to_ptr.vmem [resolvable:$true] %s64_s16  ;;  %s24_s20 = int_to_ptr.hbm [resolvable:$true] %s23_s20 }
   0xb   :  { %70 = dma.hbm_to_vmem [thread:$0]  %s63_s12, 6144, %s65_s16, [#allocation9], %s2124_s13, %s2124_s13, %s2125_s14  }
   0xc   :  { %s2127_s21 = smov [#allocation11]   ;;  %s2128_s23 = smov [#allocation2]  }
   0xd   :  { %s90_s22 = sshll.u32 %s2127_s21, 4  ;;  %s25_s5 = sshll.u32 %s2128_s23, 4  ;;  %s91_s22 = int_to_ptr.vmem [resolvable:$true] %s90_s22  ;;  %s26_s5 = int_to_ptr.vmem [resolvable:$true] %s25_s5 }
   0xe   :  { %96 = dma.hbm_to_vmem [thread:$0]  %s89_s1, 2048, %s91_s22, [#allocation12], %s2124_s13, %s2124_s13, %s2125_s14  }
   0xf   :  { %s49_s26 = sshll.u32 %s2852_s2, 4  ;;  %s75_s28 = sshll.u32 %s2854_s4, 4  ;;  %s50_s26 = int_to_ptr.hbm [resolvable:$true] %s49_s26  ;;  %s76_s28 = int_to_ptr.hbm [resolvable:$true] %s75_s28 }
  0x10   :  { %31 = dma.hbm_to_vmem [thread:$0]  %s24_s20, 6144, %s26_s5, [#allocation3], %s2124_s13, %s2124_s13, %s2125_s14  }
  0x11   :  { %s2129_s29 = smov [#allocation7]   ;;  %s2130_s9 = smov [#allocation10]  }
  0x12   :  { %s51_s30 = sshll.u32 %s2129_s29, 4  ;;  %s77_s2 = sshll.u32 %s2130_s9, 4  ;;  %s52_s30 = int_to_ptr.vmem [resolvable:$true] %s51_s30  ;;  %s78_s2 = int_to_ptr.vmem [resolvable:$true] %s77_s2 }
  0x13   :  { %57 = dma.hbm_to_vmem [thread:$0]  %s50_s26, 6144, %s52_s30, [#allocation6], %s2124_s13, %s2124_s13, %s2125_s14  }
  0x14   :  { %s101_s12 = sshll.u32 %s2856_s6, 4  ;;  %s114_s16 = sshll.u32 %s2857_s7, 4  ;;  %s102_s12 = int_to_ptr.hbm [resolvable:$true] %s101_s12  ;;  %s115_s16 = int_to_ptr.hbm [resolvable:$true] %s114_s16 }
  0x15   :  { %83 = dma.hbm_to_vmem [thread:$0]  %s76_s28, 2048, %s78_s2, [#allocation9], %s2124_s13, %s2124_s13, %s2125_s14  }
  0x16   :  { %s2131_s17 = smov [#allocation13]   ;;  %s2132_s1 = smov [#allocation14]  }
  0x17   :  { %s103_s18 = sshll.u32 %s2131_s17, 4  ;;  %s116_s6 = sshll.u32 %s2132_s1, 4  ;;  %s104_s18 = int_to_ptr.vmem [resolvable:$true] %s103_s18  ;;  %s117_s6 = int_to_ptr.vmem [resolvable:$true] %s116_s6 }
  0x18   :  { %109 = dma.hbm_to_vmem [thread:$0]  %s102_s12, 2048, %s104_s18, [#allocation12], %s2124_s13, %s2124_s13, %s2125_s14  }
  0x19   :  { %122 = dma.hbm_to_vmem [thread:$0]  %s115_s16, 2048, %s117_s6, [#allocation15], %s2124_s13, %s2124_s13, %s2125_s14  }
  0x1a   :  { %2111 = dma.done.wait [#allocation3], 6144  }
  0x1b   :  { %2112 = vsyncadd [#allocation3], 4294961152 }
  0x1c   :  { %2113 = dma.done.wait [#allocation6], 12288  }
  0x1d   :  { %2114 = vsyncadd [#allocation6], 4294955008 }
  0x1e   :  { %2115 = dma.done.wait [#allocation9], 8192  }
  0x1f   :  { %2116 = vsyncadd [#allocation9], 4294959104 }
  0x20   :  { %2117 = dma.done.wait [#allocation12], 4096  }
  0x21   :  { %2118 = vsyncadd [#allocation12], 4294963200 }
  0x22   :  { %2119 = dma.done.wait [#allocation15], 2048  }
  0x23   :  { %2120 = vsyncadd [#allocation15], 4294965248  ;;  %v202_v0 = vld [vmem:[#allocation5 + $0x78] sm:$0xff]  ;;  %v201_v1 = vld [vmem:[#allocation5 + $0x70] sm:$0xff]  ;;  %s2133_s7 = smov [#allocation16]   ;;  %s1787_s21 = sshll.u32 %s2858_s8, 4  ;;  %s1788_s21 = int_to_ptr.hbm [resolvable:$true] %s1787_s21 }
  0x24   :  { %203 = vmatpush.msra.mxu0 %v202_v0  ;;  %1804 = vmatpush.msra.mxu2 %v202_v0  ;;  %v200_v2 = vld [vmem:[#allocation5 + $0x68] sm:$0xff]  ;;  %v199_v3 = vld [vmem:[#allocation5 + $0x60] sm:$0xff]  ;;  %v198_v4 = vld [vmem:[#allocation5 + $0x58] sm:$0xff]  ;;  %s1785_s3 = sshll.u32 %s2133_s7, 4  ;;  %s1786_s3 = int_to_ptr.vmem [resolvable:$true] %s1785_s3 }
  0x25   :  { %v197_v5 = vld [vmem:[#allocation5 + $0x50] sm:$0xff]  ;;  %v196_v6 = vld [vmem:[#allocation5 + $0x48] sm:$0xff]  ;;  %v195_v7 = vld [vmem:[#allocation5 + $0x40] sm:$0xff] }
  0x26   :  { %204 = vmatpush.msra.mxu0 %v201_v1  ;;  %1805 = vmatpush.msra.mxu2 %v201_v1  ;;  %v194_v8 = vld [vmem:[#allocation5 + $0x38] sm:$0xff]  ;;  %v193_v9 = vld [vmem:[#allocation5 + $0x30] sm:$0xff]  ;;  %v192_v10 = vld [vmem:[#allocation5 + $0x28] sm:$0xff] }
  0x27   :  { %v191_v11 = vld [vmem:[#allocation5 + $0x20] sm:$0xff]  ;;  %v190_v12 = vld [vmem:[#allocation5 + $0x18] sm:$0xff]  ;;  %v189_v13 = vld [vmem:[#allocation5 + $0x10] sm:$0xff] }
  0x28   :  { %205 = vmatpush.msra.mxu0 %v200_v2  ;;  %1806 = vmatpush.msra.mxu2 %v200_v2  ;;  %v188_v14 = vld [vmem:[#allocation5 + $0x8] sm:$0xff]  ;;  %v187_v15 = vld [vmem:[#allocation5] sm:$0xff]  ;;  %v381_v18 = vld [vmem:[#allocation5 + $0xf8] sm:$0xff] }
  0x29   :  { %v2227_v16 = vld [vmem:[#allocation14] sm:$0xff]  ;;  %v561_v19 = vld [vmem:[#allocation5 + $0x178] sm:$0xff]  ;;  %v380_v20 = vld [vmem:[#allocation5 + $0xf0] sm:$0xff] }
  0x2a   :  { %206 = vmatpush.msra.mxu0 %v199_v3  ;;  %1807 = vmatpush.msra.mxu2 %v199_v3  ;;  %v2229_v17 = vld [vmem:[#allocation14 + $0x40] sm:$0xff]  ;;  %v560_v21 = vld [vmem:[#allocation5 + $0x170] sm:$0xff]  ;;  %v379_v22 = vld [vmem:[#allocation5 + $0xe8] sm:$0xff] }
  0x2b   :  { %v559_v23 = vld [vmem:[#allocation5 + $0x168] sm:$0xff]  ;;  %v378_v24 = vld [vmem:[#allocation5 + $0xe0] sm:$0xff]  ;;  %v377_v28 = vld [vmem:[#allocation5 + $0xd8] sm:$0xff] }
  0x2c   :  { %207 = vmatpush.msra.mxu0 %v198_v4  ;;  %1808 = vmatpush.msra.mxu2 %v198_v4  ;;  %v558_v25 = vld [vmem:[#allocation5 + $0x160] sm:$0xff]  ;;  %v2233_v26 = vld [vmem:[#allocation14 + $0x8] sm:$0xff]  ;;  %v557_v29 = vld [vmem:[#allocation5 + $0x158] sm:$0xff] }
  0x2d   :  { %v2235_v27 = vld [vmem:[#allocation14 + $0x48] sm:$0xff]  ;;  %v376_v30 = vld [vmem:[#allocation5 + $0xd0] sm:$0xff]  ;;  %v374_v34 = vld [vmem:[#allocation5 + $0xc0] sm:$0xff] }
  0x2e   :  { %208 = vmatpush.msra.mxu0 %v197_v5  ;;  %1809 = vmatpush.msra.mxu2 %v197_v5  ;;  %v556_v31 = vld [vmem:[#allocation5 + $0x150] sm:$0xff]  ;;  %v375_v32 = vld [vmem:[#allocation5 + $0xc8] sm:$0xff]  ;;  %v554_v35 = vld [vmem:[#allocation5 + $0x140] sm:$0xff] }
  0x2f   :  { %v555_v33 = vld [vmem:[#allocation5 + $0x148] sm:$0xff]  ;;  %v2239_v36 = vld [vmem:[#allocation14 + $0x10] sm:$0xff]  ;;  %v373_v38 = vld [vmem:[#allocation5 + $0xb8] sm:$0xff] }
  0x30   :  { %209 = vmatpush.msra.mxu0 %v196_v6  ;;  %1810 = vmatpush.msra.mxu2 %v196_v6  ;;  %v2241_v37 = vld [vmem:[#allocation14 + $0x50] sm:$0xff]  ;;  %v553_v39 = vld [vmem:[#allocation5 + $0x138] sm:$0xff]  ;;  %v371_v42 = vld [vmem:[#allocation5 + $0xa8] sm:$0xff] }
  0x31   :  { %v372_v40 = vld [vmem:[#allocation5 + $0xb0] sm:$0xff]  ;;  %v551_v43 = vld [vmem:[#allocation5 + $0x128] sm:$0xff]  ;;  %v370_v44 = vld [vmem:[#allocation5 + $0xa0] sm:$0xff] }
  0x32   :  { %210 = vmatpush.msra.mxu0 %v195_v7  ;;  %1811 = vmatpush.msra.mxu2 %v195_v7  ;;  %v552_v41 = vld [vmem:[#allocation5 + $0x130] sm:$0xff]  ;;  %v550_v45 = vld [vmem:[#allocation5 + $0x120] sm:$0xff]  ;;  %v158_v46 = vld [vmem:[#allocation14 + $0x18] sm:$0xff] }
  0x33   :  { %v2245_v47 = vld [vmem:[#allocation14 + $0x58] sm:$0xff]  ;;  %v368_v50 = vld [vmem:[#allocation5 + $0x90] sm:$0xff]  ;;  %v367_v52 = vld [vmem:[#allocation5 + $0x88] sm:$0xff] }
  0x34   :  { %211 = vmatpush.msra.mxu0 %v194_v8  ;;  %1812 = vmatpush.msra.mxu2 %v194_v8  ;;  %v369_v48 = vld [vmem:[#allocation5 + $0x98] sm:$0xff]  ;;  %v548_v51 = vld [vmem:[#allocation5 + $0x110] sm:$0xff]  ;;  %v547_v53 = vld [vmem:[#allocation5 + $0x108] sm:$0xff] }
  0x35   :  { %v549_v49 = vld [vmem:[#allocation5 + $0x118] sm:$0xff]  ;;  %v366_v54 = vld [vmem:[#allocation5 + $0x80] sm:$0xff]  ;;  %v160_v58 = vld [vmem:[#allocation14 + $0x28] sm:$0xff] }
  0x36   :  { %212 = vmatpush.msra.mxu0 %v193_v9  ;;  %1813 = vmatpush.msra.mxu2 %v193_v9  ;;  %v546_v55 = vld [vmem:[#allocation5 + $0x100] sm:$0xff]  ;;  %v168_v59 = vld [vmem:[#allocation14 + $0x68] sm:$0xff]  ;;  %v161_v60 = vld [vmem:[#allocation14 + $0x30] sm:$0xff] }
  0x37   :  { %v159_v56 = vld [vmem:[#allocation14 + $0x20] sm:$0xff]  ;;  %v169_v61 = vld [vmem:[#allocation14 + $0x70] sm:$0xff]  ;;  %v162_v62 = vld [vmem:[#allocation14 + $0x38] sm:$0xff] }
  0x38   :  { %213 = vmatpush.msra.mxu0 %v192_v10  ;;  %1814 = vmatpush.msra.mxu2 %v192_v10  ;;  %v167_v57 = vld [vmem:[#allocation14 + $0x60] sm:$0xff]  ;;  %v170_v63 = vld [vmem:[#allocation14 + $0x78] sm:$0xff] }
  0x3a   :  { %214 = vmatpush.msra.mxu0 %v191_v11  ;;  %1815 = vmatpush.msra.mxu2 %v191_v11 }
  0x3c   :  { %215 = vmatpush.msra.mxu0 %v190_v12  ;;  %1816 = vmatpush.msra.mxu2 %v190_v12 }
  0x3e   :  { %216 = vmatpush.msra.mxu0 %v189_v13  ;;  %1817 = vmatpush.msra.mxu2 %v189_v13 }
  0x40   :  { %217 = vmatpush.msra.mxu0 %v188_v14  ;;  %1818 = vmatpush.msra.mxu2 %v188_v14 }
  0x42   :  { %218 = vmatpush.msra.mxu0 %v187_v15  ;;  %1819 = vmatpush.msra.mxu2 %v187_v15 }
  0x43   :  { %219 = vmatmul.f32.vlgmr.msra.gmra.mxu0 %v2227_v16  ;;  %243 = vmatmul.f32.vlgmr.msra.gmra.mxu2 %v2229_v17 }
  0x44   :  { %382 = vmatpush.msrb.mxu2 %v381_v18  ;;  %562 = vmatpush.msrb.mxu0 %v561_v19 }
  0x46   :  { %383 = vmatpush.msrb.mxu2 %v380_v20  ;;  %563 = vmatpush.msrb.mxu0 %v560_v21 }
  0x48   :  { %384 = vmatpush.msrb.mxu2 %v379_v22  ;;  %564 = vmatpush.msrb.mxu0 %v559_v23 }
  0x4a   :  { %385 = vmatpush.msrb.mxu2 %v378_v24  ;;  %565 = vmatpush.msrb.mxu0 %v558_v25 }
  0x4b   :  { %222 = vmatmul.f32.gmra.mxu0 %v2233_v26  ;;  %246 = vmatmul.f32.gmra.mxu2 %v2235_v27 }
  0x4c   :  { %386 = vmatpush.msrb.mxu2 %v377_v28  ;;  %566 = vmatpush.msrb.mxu0 %v557_v29 }
  0x4e   :  { %387 = vmatpush.msrb.mxu2 %v376_v30  ;;  %567 = vmatpush.msrb.mxu0 %v556_v31  ;;  %v2300_v31 = vld [vmem:[#allocation2 + $0x40] sm:$0xff] }
  0x50   :  { %388 = vmatpush.msrb.mxu2 %v375_v32  ;;  %568 = vmatpush.msrb.mxu0 %v555_v33 }
  0x52   :  { %389 = vmatpush.msrb.mxu2 %v374_v34  ;;  %569 = vmatpush.msrb.mxu0 %v554_v35  ;;  %v2305_v34 = vld [vmem:[#allocation2] sm:$0xff]  ;;  %v2307_v35 = vld [vmem:[#allocation2 + $0x48] sm:$0xff] }
  0x53   :  { %225 = vmatmul.f32.gmra.mxu0 %v2239_v36  ;;  %249 = vmatmul.f32.gmra.mxu2 %v2241_v37 }
  0x54   :  { %390 = vmatpush.msrb.mxu2 %v373_v38  ;;  %570 = vmatpush.msrb.mxu0 %v553_v39  ;;  %v2311_v38 = vld [vmem:[#allocation2 + $0x8] sm:$0xff]  ;;  %v2313_v39 = vld [vmem:[#allocation2 + $0x50] sm:$0xff] }
  0x56   :  { %391 = vmatpush.msrb.mxu2 %v372_v40  ;;  %571 = vmatpush.msrb.mxu0 %v552_v41 }
  0x58   :  { %392 = vmatpush.msrb.mxu2 %v371_v42  ;;  %572 = vmatpush.msrb.mxu0 %v551_v43  ;;  %v2317_v42 = vld [vmem:[#allocation2 + $0x10] sm:$0xff]  ;;  %v2319_v43 = vld [vmem:[#allocation2 + $0x58] sm:$0xff] }
  0x5a   :  { %393 = vmatpush.msrb.mxu2 %v370_v44  ;;  %573 = vmatpush.msrb.mxu0 %v550_v45 }
  0x5b   :  { %228 = vmatmul.f32.gmra.mxu0 %v158_v46  ;;  %252 = vmatmul.f32.gmra.mxu2 %v2245_v47 }
  0x5c   :  { %394 = vmatpush.msrb.mxu2 %v369_v48  ;;  %574 = vmatpush.msrb.mxu0 %v549_v49 }
  0x5e   :  { %395 = vmatpush.msrb.mxu2 %v368_v50  ;;  %575 = vmatpush.msrb.mxu0 %v548_v51  ;;  %v2329_v50 = vld [vmem:[#allocation2 + $0x20] sm:$0xff]  ;;  %v2331_v51 = vld [vmem:[#allocation2 + $0x68] sm:$0xff] }
  0x5f   :  { %2880 = vst [vmem:[#allocation23_spill] sm:$0xff] %v2331_v51 }
  0x60   :  { %396 = vmatpush.msrb.mxu2 %v367_v52  ;;  %576 = vmatpush.msrb.mxu0 %v547_v53 }
  0x62   :  { %397 = vmatpush.msrb.mxu2 %v366_v54  ;;  %577 = vmatpush.msrb.mxu0 %v546_v55  ;;  %v2335_v54 = vld [vmem:[#allocation2 + $0x28] sm:$0xff]  ;;  %v2337_v55 = vld [vmem:[#allocation2 + $0x70] sm:$0xff] }
  0x63   :  { %231 = vmatmul.f32.gmra.mxu0 %v159_v56  ;;  %255 = vmatmul.f32.gmra.mxu2 %v167_v57  ;;  %2881 = vst [vmem:[#allocation24_spill] sm:$0xff] %v2337_v55 }
  0x6b   :  { %234 = vmatmul.f32.gmra.mxu0 %v160_v58  ;;  %258 = vmatmul.f32.gmra.mxu2 %v168_v59 }
  0x73   :  { %237 = vmatmul.f32.gmra.mxu0 %v161_v60  ;;  %261 = vmatmul.f32.gmra.mxu2 %v169_v61 }
  0x7b   :  { %240 = vmatmul.f32.gmra.mxu0 %v162_v62  ;;  %264 = vmatmul.f32.gmra.mxu2 %v170_v63 }
  0x83   :  { %398 = vmatmul.f32.vlgmr.msrb.gmra.mxu2 %v2227_v16  ;;  %578 = vmatmul.f32.vlgmr.msrb.gmra.mxu0 %v2227_v16 }
  0x8b   :  { %401 = vmatmul.f32.gmra.mxu2 %v2233_v26  ;;  %581 = vmatmul.f32.gmra.mxu0 %v2233_v26 }
  0x93   :  { %404 = vmatmul.f32.gmra.mxu2 %v2239_v36  ;;  %584 = vmatmul.f32.gmra.mxu0 %v2239_v36 }
  0x9b   :  { %407 = vmatmul.f32.gmra.mxu2 %v158_v46  ;;  %587 = vmatmul.f32.gmra.mxu0 %v158_v46  ;;  %v2323_v46 = vld [vmem:[#allocation2 + $0x18] sm:$0xff] }
  0xa3   :  { %410 = vmatmul.f32.gmra.mxu2 %v159_v56  ;;  %590 = vmatmul.f32.gmra.mxu0 %v159_v56 }
  0xab   :  { %413 = vmatmul.f32.gmra.mxu2 %v160_v58  ;;  %593 = vmatmul.f32.gmra.mxu0 %v160_v58  ;;  %v2341_v58 = vld [vmem:[#allocation2 + $0x30] sm:$0xff] }
  0xb3   :  { %416 = vmatmul.f32.gmra.mxu2 %v161_v60  ;;  %596 = vmatmul.f32.gmra.mxu0 %v161_v60 }
  0xbb   :  { %419 = vmatmul.f32.gmra.mxu2 %v162_v62  ;;  %599 = vmatmul.f32.gmra.mxu0 %v162_v62  ;;  %v2347_v62 = vld [vmem:[#allocation2 + $0x38] sm:$0xff] }
  0xc0   :  { %v2254_v0 = vpop.f32.mrf.mxu0 }
  0xc3   :  { %422 = vmatmul.f32.gmra.mxu2 %v2229_v17  ;;  %602 = vmatmul.f32.gmra.mxu0 %v2229_v17 }
  0xc6   :  { %v244_v1 = vpop.f32.mrf.mxu2 }
  0xc8   :  { %v2258_v2 = vpop.f32.mrf.mxu0 }
  0xcb   :  { %425 = vmatmul.f32.gmra.mxu2 %v2235_v27  ;;  %605 = vmatmul.f32.gmra.mxu0 %v2235_v27 }
  0xce   :  { %v247_v3 = vpop.f32.mrf.mxu2 }
  0xd0   :  { %v226_v4 = vpop.f32.mrf.mxu0 }
  0xd3   :  { %428 = vmatmul.f32.gmra.mxu2 %v2241_v37  ;;  %608 = vmatmul.f32.gmra.mxu0 %v2241_v37 }
  0xd6   :  { %v250_v5 = vpop.f32.mrf.mxu2 }
  0xd8   :  { %v229_v6 = vpop.f32.mrf.mxu0 }
  0xdb   :  { %431 = vmatmul.f32.gmra.mxu2 %v2245_v47  ;;  %611 = vmatmul.f32.gmra.mxu0 %v2245_v47  ;;  %v2325_v47 = vld [vmem:[#allocation2 + $0x60] sm:$0xff] }
  0xde   :  { %v253_v7 = vpop.f32.mrf.mxu2 }
  0xe0   :  { %v232_v8 = vpop.f32.mrf.mxu0 }
  0xe3   :  { %434 = vmatmul.f32.gmra.mxu2 %v167_v57  ;;  %614 = vmatmul.f32.gmra.mxu0 %v167_v57 }
  0xe6   :  { %v256_v9 = vpop.f32.mrf.mxu2 }
  0xe8   :  { %v235_v10 = vpop.f32.mrf.mxu0 }
  0xeb   :  { %437 = vmatmul.f32.gmra.mxu2 %v168_v59  ;;  %617 = vmatmul.f32.gmra.mxu0 %v168_v59  ;;  %v2343_v59 = vld [vmem:[#allocation2 + $0x78] sm:$0xff] }
  0xec   :  { %2882 = vst [vmem:[#allocation25_spill] sm:$0xff] %v2343_v59 }
  0xee   :  { %v259_v11 = vpop.f32.mrf.mxu2 }
  0xf0   :  { %v238_v12 = vpop.f32.mrf.mxu0 }
  0xf3   :  { %440 = vmatmul.f32.gmra.mxu2 %v169_v61  ;;  %620 = vmatmul.f32.gmra.mxu0 %v169_v61 }
  0xf6   :  { %v262_v13 = vpop.f32.mrf.mxu2 }
  0xf8   :  { %v241_v14 = vpop.f32.mrf.mxu0 }
  0xfb   :  { %443 = vmatmul.f32.gmra.mxu2 %v170_v63  ;;  %623 = vmatmul.f32.gmra.mxu0 %v170_v63 }
  0xfe   :  { %v265_v15 = vpop.f32.mrf.mxu2 }
  0xff   :  { %284 = vmatpush.msra.mxu1 %v265_v15  ;;  %1820 = vmatpush.msra.mxu3 %v265_v15  ;;  %v2409_v15 = vld [vmem:[#allocation2 + $0x138] sm:$0xff] }
 0x100   :  { %v2266_v16 = vpop.f32.mrf.mxu0  ;;  %2890 = vst [vmem:[#allocation33_spill] sm:$0xff] %v2409_v15 }
 0x101   :  { %285 = vmatpush.msra.mxu1 %v262_v13  ;;  %1821 = vmatpush.msra.mxu3 %v262_v13 }
 0x103   :  { %286 = vmatpush.msra.mxu1 %v259_v11  ;;  %1822 = vmatpush.msra.mxu3 %v259_v11  ;;  %v2399_v11 = vld [vmem:[#allocation2 + $0xa8] sm:$0xff] }
 0x105   :  { %287 = vmatpush.msra.mxu1 %v256_v9  ;;  %1823 = vmatpush.msra.mxu3 %v256_v9  ;;  %v2393_v9 = vld [vmem:[#allocation2 + $0xa0] sm:$0xff] }
 0x106   :  { %v2268_v17 = vpop.f32.mrf.mxu2 }
 0x107   :  { %288 = vmatpush.msra.mxu1 %v253_v7  ;;  %1824 = vmatpush.msra.mxu3 %v253_v7  ;;  %v2387_v7 = vld [vmem:[#allocation2 + $0x98] sm:$0xff] }
 0x108   :  { %v2270_v18 = vpop.f32.mrf.mxu0 }
 0x109   :  { %289 = vmatpush.msra.mxu1 %v250_v5  ;;  %1825 = vmatpush.msra.mxu3 %v250_v5  ;;  %v2381_v5 = vld [vmem:[#allocation2 + $0x90] sm:$0xff] }
 0x10b   :  { %290 = vmatpush.msra.mxu1 %v247_v3  ;;  %1826 = vmatpush.msra.mxu3 %v247_v3  ;;  %v2375_v3 = vld [vmem:[#allocation2 + $0x88] sm:$0xff] }
 0x10d   :  { %291 = vmatpush.msra.mxu1 %v244_v1  ;;  %1827 = vmatpush.msra.mxu3 %v244_v1  ;;  %v2368_v1 = vld [vmem:[#allocation2 + $0x80] sm:$0xff] }
 0x10e   :  { %v2272_v19 = vpop.f32.mrf.mxu2 }
 0x10f   :  { %292 = vmatpush.msra.mxu1 %v241_v14  ;;  %1828 = vmatpush.msra.mxu3 %v241_v14  ;;  %v2407_v14 = vld [vmem:[#allocation2 + $0xb0] sm:$0xff] }
 0x110   :  { %v2274_v20 = vpop.f32.mrf.mxu0 }
 0x111   :  { %293 = vmatpush.msra.mxu1 %v238_v12  ;;  %1829 = vmatpush.msra.mxu3 %v238_v12  ;;  %v2401_v12 = vld [vmem:[#allocation2 + $0x130] sm:$0xff] }
 0x112   :  { %2889 = vst [vmem:[#allocation32_spill] sm:$0xff] %v2401_v12 }
 0x113   :  { %294 = vmatpush.msra.mxu1 %v235_v10  ;;  %1830 = vmatpush.msra.mxu3 %v235_v10  ;;  %v2395_v10 = vld [vmem:[#allocation2 + $0x128] sm:$0xff] }
 0x114   :  { %2888 = vst [vmem:[#allocation31_spill] sm:$0xff] %v2395_v10 }
 0x115   :  { %295 = vmatpush.msra.mxu1 %v232_v8  ;;  %1831 = vmatpush.msra.mxu3 %v232_v8  ;;  %v2389_v8 = vld [vmem:[#allocation2 + $0x120] sm:$0xff] }
 0x116   :  { %v2276_v21 = vpop.f32.mrf.mxu2  ;;  %2887 = vst [vmem:[#allocation30_spill] sm:$0xff] %v2389_v8 }
 0x117   :  { %296 = vmatpush.msra.mxu1 %v229_v6  ;;  %1832 = vmatpush.msra.mxu3 %v229_v6  ;;  %v2383_v6 = vld [vmem:[#allocation2 + $0x118] sm:$0xff] }
 0x118   :  { %v2278_v22 = vpop.f32.mrf.mxu0  ;;  %2886 = vst [vmem:[#allocation29_spill] sm:$0xff] %v2383_v6 }
 0x119   :  { %297 = vmatpush.msra.mxu1 %v226_v4  ;;  %1833 = vmatpush.msra.mxu3 %v226_v4  ;;  %v2377_v4 = vld [vmem:[#allocation2 + $0x110] sm:$0xff] }
 0x11a   :  { %2885 = vst [vmem:[#allocation28_spill] sm:$0xff] %v2377_v4 }
 0x11b   :  { %298 = vmatpush.msra.mxu1 %v2258_v2  ;;  %1834 = vmatpush.msra.mxu3 %v2258_v2  ;;  %v2371_v2 = vld [vmem:[#allocation2 + $0x108] sm:$0xff] }
 0x11c   :  { %2884 = vst [vmem:[#allocation27_spill] sm:$0xff] %v2371_v2 }
 0x11d   :  { %299 = vmatpush.msra.mxu1 %v2254_v0  ;;  %1835 = vmatpush.msra.mxu3 %v2254_v0  ;;  %v2361_v0 = vld [vmem:[#allocation2 + $0x100] sm:$0xff] }
 0x11e   :  { %v2284_v23 = vpop.f32.mrf.mxu2  ;;  %324 = vmatmul.f32.vlgmr.msra.gmra.mxu3 %v2300_v31  ;;  %300 = vmatmul.f32.vlgmr.msra.gmra.mxu1 %v2305_v34  ;;  %2883 = vst [vmem:[#allocation26_spill] sm:$0xff] %v2361_v0 }
 0x120   :  { %v2286_v24 = vpop.f32.mrf.mxu0 }
 0x126   :  { %v2288_v25 = vpop.f32.mrf.mxu2  ;;  %327 = vmatmul.f32.gmra.mxu3 %v2307_v35  ;;  %303 = vmatmul.f32.gmra.mxu1 %v2311_v38 }
 0x128   :  { %v2290_v26 = vpop.f32.mrf.mxu0 }
 0x12e   :  { %v2292_v27 = vpop.f32.mrf.mxu2  ;;  %330 = vmatmul.f32.gmra.mxu3 %v2313_v39  ;;  %306 = vmatmul.f32.gmra.mxu1 %v2317_v42 }
 0x130   :  { %v2294_v28 = vpop.f32.mrf.mxu0 }
 0x136   :  { %v2296_v29 = vpop.f32.mrf.mxu2  ;;  %333 = vmatmul.f32.gmra.mxu3 %v2319_v43  ;;  %309 = vmatmul.f32.gmra.mxu1 %v2323_v46 }
 0x138   :  { %v2298_v30 = vpop.f32.mrf.mxu0 }
 0x13e   :  { %v2303_v32 = vpop.f32.mrf.mxu2  ;;  %336 = vmatmul.f32.gmra.mxu3 %v2325_v47  ;;  %312 = vmatmul.f32.gmra.mxu1 %v2329_v50 }
 0x140   :  { %v603_v33 = vpop.f32.mrf.mxu0 }
 0x146   :  { %v423_v36 = vpop.f32.mrf.mxu2  ;;  %339 = vmatmul.f32.gmra.mxu3 %v2331_v51  ;;  %315 = vmatmul.f32.gmra.mxu1 %v2335_v54 }
 0x148   :  { %v606_v37 = vpop.f32.mrf.mxu0 }
 0x14e   :  { %v426_v40 = vpop.f32.mrf.mxu2  ;;  %342 = vmatmul.f32.gmra.mxu3 %v2337_v55  ;;  %318 = vmatmul.f32.gmra.mxu1 %v2341_v58 }
 0x150   :  { %v609_v41 = vpop.f32.mrf.mxu0 }
 0x156   :  { %v429_v44 = vpop.f32.mrf.mxu2  ;;  %345 = vmatmul.f32.gmra.mxu3 %v2343_v59  ;;  %321 = vmatmul.f32.gmra.mxu1 %v2347_v62 }
 0x158   :  { %v612_v45 = vpop.f32.mrf.mxu0 }
 0x15e   :  { %v432_v48 = vpop.f32.mrf.mxu2 }
 0x160   :  { %v615_v49 = vpop.f32.mrf.mxu0 }
 0x166   :  { %v435_v52 = vpop.f32.mrf.mxu2 }
 0x168   :  { %v618_v53 = vpop.f32.mrf.mxu0 }
 0x16e   :  { %v438_v56 = vpop.f32.mrf.mxu2 }
 0x170   :  { %v621_v57 = vpop.f32.mrf.mxu0 }
 0x176   :  { %v441_v60 = vpop.f32.mrf.mxu2 }
 0x178   :  { %v624_v61 = vpop.f32.mrf.mxu0 }
 0x179   :  { %644 = vmatpush.msrb.mxu1 %v624_v61  ;;  %v2453_v61 = vld [vmem:[#allocation2 + $0xd8] sm:$0xff] }
 0x17b   :  { %645 = vmatpush.msrb.mxu1 %v621_v57  ;;  %v766_v57 = vld [vmem:[#allocation7 + $0x48] sm:$0xff] }
 0x17d   :  { %646 = vmatpush.msrb.mxu1 %v618_v53  ;;  %v767_v53 = vld [vmem:[#allocation7 + $0x50] sm:$0xff] }
 0x17e   :  { %v444_v63 = vpop.f32.mrf.mxu2 }
 0x17f   :  { %464 = vmatpush.msrb.mxu3 %v444_v63  ;;  %647 = vmatpush.msrb.mxu1 %v615_v49  ;;  %v768_v49 = vld [vmem:[#allocation7 + $0x58] sm:$0xff]  ;;  %v2455_v63 = vld [vmem:[#allocation2 + $0x160] sm:$0xff] }
 0x180   :  { %2895 = vst [vmem:[#allocation38_spill] sm:$0xff] %v2455_v63 }
 0x181   :  { %465 = vmatpush.msrb.mxu3 %v441_v60  ;;  %648 = vmatpush.msrb.mxu1 %v612_v45  ;;  %v932_v45 = vld [vmem:[#allocation7 + $0xe0] sm:$0xff]  ;;  %v929_v60 = vld [vmem:[#allocation7 + $0xc8] sm:$0xff] }
 0x183   :  { %466 = vmatpush.msrb.mxu3 %v438_v56  ;;  %649 = vmatpush.msrb.mxu1 %v609_v41  ;;  %v930_v56 = vld [vmem:[#allocation7 + $0xd0] sm:$0xff] }
 0x185   :  { %467 = vmatpush.msrb.mxu3 %v435_v52  ;;  %650 = vmatpush.msrb.mxu1 %v606_v37  ;;  %v2443_v37 = vld [vmem:[#allocation2 + $0xd0] sm:$0xff]  ;;  %v931_v52 = vld [vmem:[#allocation7 + $0xd8] sm:$0xff] }
 0x187   :  { %468 = vmatpush.msrb.mxu3 %v432_v48  ;;  %651 = vmatpush.msrb.mxu1 %v603_v33  ;;  %v770_v33 = vld [vmem:[#allocation7 + $0x68] sm:$0xff] }
 0x189   :  { %469 = vmatpush.msrb.mxu3 %v429_v44  ;;  %652 = vmatpush.msrb.mxu1 %v2298_v30  ;;  %v771_v30 = vld [vmem:[#allocation7 + $0x70] sm:$0xff]  ;;  %v769_v44 = vld [vmem:[#allocation7 + $0x60] sm:$0xff] }
 0x18b   :  { %470 = vmatpush.msrb.mxu3 %v426_v40  ;;  %653 = vmatpush.msrb.mxu1 %v2294_v28  ;;  %v772_v28 = vld [vmem:[#allocation7 + $0x78] sm:$0xff] }
 0x18c   :  { %773 = vmatpush.msra.mxu2 %v772_v28  ;;  %v2445_v40 = vld [vmem:[#allocation2 + $0x158] sm:$0xff]  ;;  %v765_v28 = vld [vmem:[#allocation7 + $0x40] sm:$0xff] }
 0x18d   :  { %471 = vmatpush.msrb.mxu3 %v423_v36  ;;  %654 = vmatpush.msrb.mxu1 %v2290_v26  ;;  %v933_v36 = vld [vmem:[#allocation7 + $0xe8] sm:$0xff]  ;;  %2894 = vst [vmem:[#allocation37_spill] sm:$0xff] %v2445_v40 }
 0x18e   :  { %774 = vmatpush.msra.mxu2 %v771_v30 }
 0x18f   :  { %472 = vmatpush.msrb.mxu3 %v2303_v32  ;;  %655 = vmatpush.msrb.mxu1 %v2286_v24  ;;  %v2433_v24 = vld [vmem:[#allocation2 + $0xc8] sm:$0xff]  ;;  %v934_v32 = vld [vmem:[#allocation7 + $0xf0] sm:$0xff] }
 0x190   :  { %775 = vmatpush.msra.mxu2 %v770_v33  ;;  %v927_v33 = vld [vmem:[#allocation7 + $0xb8] sm:$0xff] }
 0x191   :  { %473 = vmatpush.msrb.mxu3 %v2296_v29  ;;  %656 = vmatpush.msrb.mxu1 %v2278_v22  ;;  %v935_v29 = vld [vmem:[#allocation7 + $0xf8] sm:$0xff] }
 0x192   :  { %936 = vmatpush.msra.mxu0 %v935_v29  ;;  %776 = vmatpush.msra.mxu2 %v769_v44  ;;  %v928_v29 = vld [vmem:[#allocation7 + $0xc0] sm:$0xff]  ;;  %v926_v44 = vld [vmem:[#allocation7 + $0xb0] sm:$0xff] }
 0x193   :  { %474 = vmatpush.msrb.mxu3 %v2292_v27  ;;  %657 = vmatpush.msrb.mxu1 %v2274_v20  ;;  %v2439_v27 = vld [vmem:[#allocation2 + $0x150] sm:$0xff] }
 0x194   :  { %2893 = vst [vmem:[#allocation36_spill] sm:$0xff] %v2439_v27  ;;  %937 = vmatpush.msra.mxu0 %v934_v32  ;;  %777 = vmatpush.msra.mxu2 %v768_v49  ;;  %v764_v32 = vld [vmem:[#allocation7 + $0x38] sm:$0xff]  ;;  %v762_v49 = vld [vmem:[#allocation7 + $0x28] sm:$0xff] }
 0x195   :  { %475 = vmatpush.msrb.mxu3 %v2288_v25  ;;  %658 = vmatpush.msrb.mxu1 %v2270_v18  ;;  %v2417_v18 = vld [vmem:[#allocation2 + $0xb8] sm:$0xff] }
 0x196   :  { %938 = vmatpush.msra.mxu0 %v933_v36  ;;  %778 = vmatpush.msra.mxu2 %v767_v53  ;;  %v763_v36 = vld [vmem:[#allocation7 + $0x30] sm:$0xff]  ;;  %v2463_v53 = vld [vmem:[#allocation2 + $0xe0] sm:$0xff] }
 0x197   :  { %476 = vmatpush.msrb.mxu3 %v2284_v23  ;;  %659 = vmatpush.msrb.mxu1 %v2266_v16  ;;  %v2429_v23 = vld [vmem:[#allocation2 + $0x148] sm:$0xff] }
 0x198   :  { %660 = vmatmul.f32.vlgmr.msrb.gmra.mxu1 %v2361_v0  ;;  %2892 = vst [vmem:[#allocation35_spill] sm:$0xff] %v2429_v23  ;;  %939 = vmatpush.msra.mxu0 %v932_v45 }
 0x199   :  { %477 = vmatpush.msrb.mxu3 %v2276_v21  ;;  %v2425_v21 = vld [vmem:[#allocation2 + $0xc0] sm:$0xff]  ;;  %779 = vmatpush.msra.mxu2 %v766_v57 }
 0x19a   :  { %940 = vmatpush.msra.mxu0 %v931_v52  ;;  %v925_v52 = vld [vmem:[#allocation7 + $0xa8] sm:$0xff]  ;;  %v924_v57 = vld [vmem:[#allocation7 + $0xa0] sm:$0xff] }
 0x19b   :  { %478 = vmatpush.msrb.mxu3 %v2272_v19  ;;  %v2403_v13 = vpop.f32.mrf.mxu1  ;;  %v2419_v19 = vld [vmem:[#allocation2 + $0x140] sm:$0xff]  ;;  %780 = vmatpush.msra.mxu2 %v765_v28  ;;  %v760_v28 = vld [vmem:[#allocation7 + $0x18] sm:$0xff] }
 0x19c   :  { %2891 = vst [vmem:[#allocation34_spill] sm:$0xff] %v2419_v19  ;;  %941 = vmatpush.msra.mxu0 %v930_v56  ;;  %v761_v56 = vld [vmem:[#allocation7 + $0x20] sm:$0xff] }
 0x19d   :  { %479 = vmatpush.msrb.mxu3 %v2268_v17  ;;  %781 = vmatpush.msra.mxu2 %v764_v32 }
 0x19e   :  { %480 = vmatmul.f32.vlgmr.msrb.gmra.mxu3 %v2368_v1  ;;  %942 = vmatpush.msra.mxu0 %v929_v60  ;;  %v2465_v60 = vld [vmem:[#allocation2 + $0x168] sm:$0xff] }
 0x19f   :  { %782 = vmatpush.msra.mxu2 %v763_v36  ;;  %2896 = vst [vmem:[#allocation39_spill] sm:$0xff] %v2465_v60  ;;  %v922_v36 = vld [vmem:[#allocation7 + $0x90] sm:$0xff] }
 0x1a0   :  { %663 = vmatmul.f32.gmra.mxu1 %v2371_v2  ;;  %943 = vmatpush.msra.mxu0 %v928_v29  ;;  %v923_v29 = vld [vmem:[#allocation7 + $0x98] sm:$0xff]  ;;  %v173_v2 = vld [vmem:[#allocation10 + $0x10] sm:$0xff] }
 0x1a1   :  { %v2415_v17 = vpop.f32.mrf.mxu3  ;;  %783 = vmatpush.msra.mxu2 %v762_v49  ;;  %v758_v49 = vld [vmem:[#allocation7 + $0x8] sm:$0xff] }
 0x1a2   :  { %944 = vmatpush.msra.mxu0 %v927_v33  ;;  %v759_v33 = vld [vmem:[#allocation7 + $0x10] sm:$0xff] }
 0x1a3   :  { %v2412_v16 = vpop.f32.mrf.mxu1  ;;  %784 = vmatpush.msra.mxu2 %v761_v56  ;;  %v2475_v56 = vld [vmem:[#allocation2 + $0x170] sm:$0xff] }
 0x1a4   :  { %945 = vmatpush.msra.mxu0 %v926_v44  ;;  %v2471_v44 = vld [vmem:[#allocation2 + $0xe8] sm:$0xff]  ;;  %2897 = vst [vmem:[#allocation40_spill] sm:$0xff] %v2475_v56 }
 0x1a5   :  { %785 = vmatpush.msra.mxu2 %v760_v28  ;;  %v2479_v28 = vld [vmem:[#allocation2 + $0xf0] sm:$0xff] }
 0x1a6   :  { %483 = vmatmul.f32.gmra.mxu3 %v2375_v3  ;;  %946 = vmatpush.msra.mxu0 %v925_v52  ;;  %v921_v52 = vld [vmem:[#allocation7 + $0x88] sm:$0xff]  ;;  %2898 = vst [vmem:[#allocation41_spill] sm:$0xff] %v2479_v28 }
 0x1a7   :  { %786 = vmatpush.msra.mxu2 %v759_v33 }
 0x1a8   :  { %666 = vmatmul.f32.gmra.mxu1 %v2377_v4  ;;  %947 = vmatpush.msra.mxu0 %v924_v57  ;;  %v757_v57 = vld [vmem:[#allocation7] sm:$0xff] }
 0x1a9   :  { %v2427_v22 = vpop.f32.mrf.mxu3  ;;  %787 = vmatpush.msra.mxu2 %v758_v49  ;;  %v2489_v49 = vld [vmem:[#allocation2 + $0xf8] sm:$0xff] }
 0x1aa   :  { %948 = vmatpush.msra.mxu0 %v923_v29  ;;  %2900 = vst [vmem:[#allocation43_spill] sm:$0xff] %v2489_v49 }
 0x1ab   :  { %v2423_v20 = vpop.f32.mrf.mxu1  ;;  %788 = vmatpush.msra.mxu2 %v757_v57  ;;  %v171_v57 = vld [vmem:[#allocation10] sm:$0xff] }
 0x1ac   :  { %949 = vmatpush.msra.mxu0 %v922_v36  ;;  %v2485_v36 = vld [vmem:[#allocation2 + $0x178] sm:$0xff] }
 0x1ad   :  { %2899 = vst [vmem:[#allocation42_spill] sm:$0xff] %v2485_v36 }
 0x1ae   :  { %486 = vmatmul.f32.gmra.mxu3 %v2381_v5  ;;  %950 = vmatpush.msra.mxu0 %v921_v52 }
 0x1b0   :  { %669 = vmatmul.f32.gmra.mxu1 %v2383_v6 }
 0x1b1   :  { %v2437_v26 = vpop.f32.mrf.mxu3 }
 0x1b3   :  { %v2435_v25 = vpop.f32.mrf.mxu1 }
 0x1b6   :  { %489 = vmatmul.f32.gmra.mxu3 %v2387_v7 }
 0x1b8   :  { %672 = vmatmul.f32.gmra.mxu1 %v2389_v8 }
 0x1b9   :  { %v2450_v48 = vpop.f32.mrf.mxu3 }
 0x1bb   :  { %v2447_v41 = vpop.f32.mrf.mxu1 }
 0x1be   :  { %492 = vmatmul.f32.gmra.mxu3 %v2393_v9 }
 0x1c0   :  { %675 = vmatmul.f32.gmra.mxu1 %v2395_v10 }
 0x1c1   :  { %v2461_v45 = vpop.f32.mrf.mxu3 }
 0x1c3   :  { %v2458_v30 = vpop.f32.mrf.mxu1 }
 0x1c6   :  { %495 = vmatmul.f32.gmra.mxu3 %v2399_v11 }
 0x1c8   :  { %678 = vmatmul.f32.gmra.mxu1 %v2401_v12 }
 0x1cb   :  { %v2469_v32 = vpop.f32.mrf.mxu1 }
 0x1ce   :  { %498 = vmatmul.f32.gmra.mxu3 %v2407_v14 }
 0x1d0   :  { %681 = vmatmul.f32.gmra.mxu1 %v2409_v15  ;;  %v172_v15 = vld [vmem:[#allocation10 + $0x8] sm:$0xff] }
 0x1d3   :  { %v2481_v29 = vpop.f32.mrf.mxu1 }
 0x1d6   :  { %501 = vmatmul.f32.gmra.mxu3 %v2417_v18 }
 0x1d8   :  { %684 = vmatmul.f32.gmra.mxu1 %v2419_v19 }
 0x1de   :  { %504 = vmatmul.f32.gmra.mxu3 %v2425_v21 }
 0x1e0   :  { %687 = vmatmul.f32.gmra.mxu1 %v2429_v23 }
 0x1e6   :  { %507 = vmatmul.f32.gmra.mxu3 %v2433_v24 }
 0x1e8   :  { %690 = vmatmul.f32.gmra.mxu1 %v2439_v27 }
 0x1ee   :  { %510 = vmatmul.f32.gmra.mxu3 %v2443_v37 }
 0x1f0   :  { %693 = vmatmul.f32.gmra.mxu1 %v2445_v40  ;;  %v349_v40 = vadd.f32 %v2403_v13, %v171_v57  ;;  %v351_v13 = vadd.f32 %v2423_v20, %v173_v2  ;;  %v175_v20 = vld [vmem:[#allocation10 + $0x20] sm:$0xff] }
 0x1f6   :  { %513 = vmatmul.f32.gmra.mxu3 %v2453_v61 }
 0x1f8   :  { %696 = vmatmul.f32.gmra.mxu1 %v2455_v63  ;;  %v2473_v63 = vpop.f32.mrf.mxu3 }
 0x1fe   :  { %516 = vmatmul.f32.gmra.mxu3 %v2463_v53 }
 0x200   :  { %699 = vmatmul.f32.gmra.mxu1 %v2465_v60  ;;  %v920_v60 = vld [vmem:[#allocation7 + $0x80] sm:$0xff]  ;;  %v2483_v33 = vpop.f32.mrf.mxu3 }
 0x201   :  { %951 = vmatpush.msra.mxu0 %v920_v60 }
 0x206   :  { %519 = vmatmul.f32.gmra.mxu3 %v2471_v44 }
 0x208   :  { %702 = vmatmul.f32.gmra.mxu1 %v2475_v56  ;;  %v2492_v60 = vpop.f32.mrf.mxu3 }
 0x20e   :  { %522 = vmatmul.f32.gmra.mxu3 %v2479_v28 }
 0x210   :  { %705 = vmatmul.f32.gmra.mxu1 %v2485_v36  ;;  %v350_v36 = vadd.f32 %v2412_v16, %v172_v15  ;;  %v174_v16 = vld [vmem:[#allocation10 + $0x18] sm:$0xff] }
 0x215   :  { %v661_v52 = vpop.f32.mrf.mxu1 }
 0x216   :  { %525 = vmatmul.f32.gmra.mxu3 %v2489_v49 }
 0x21d   :  { %v664_v56 = vpop.f32.mrf.mxu1 }
 0x221   :  { %v481_v27 = vpop.f32.mrf.mxu3 }
 0x222   :  { %v529_v23 = vadd.f32 %v481_v27, %v349_v40 }
 0x224   :  { %v709_v19 = vadd.f32 %v661_v52, %v529_v23  ;;  %v353_v52 = vadd.f32 %v2447_v41, %v175_v20 }
 0x225   :  { %v667_v12 = vpop.f32.mrf.mxu1 }
 0x226   :  { %v2495_v10 = vmax.f32 %v709_v19, 0.0 }
 0x228   :  { %789 = vmatmul.f32.vlgmr.msra.gmra.mxu2 %v2495_v10  ;;  %952 = vmatmul.f32.vlgmr.msra.gmra.mxu0 %v2495_v10 }
 0x229   :  { %v484_v8 = vpop.f32.mrf.mxu3 }
 0x22a   :  { %v530_v6 = vadd.f32 %v484_v8, %v350_v36  ;;  %v352_v8 = vadd.f32 %v2435_v25, %v174_v16 }
 0x22c   :  { %v710_v4 = vadd.f32 %v664_v56, %v530_v6 }
 0x22d   :  { %v670_v0 = vpop.f32.mrf.mxu1 }
 0x22e   :  { %v2500_v59 = vmax.f32 %v710_v4, 0.0 }
 0x230   :  { %792 = vmatmul.f32.gmra.mxu2 %v2500_v59  ;;  %955 = vmatmul.f32.gmra.mxu0 %v2500_v59 }
 0x231   :  { %v487_v19 = vpop.f32.mrf.mxu3 }
 0x232   :  { %v531_v23 = vadd.f32 %v487_v19, %v351_v13  ;;  %v176_v13 = vld [vmem:[#allocation10 + $0x28] sm:$0xff] }
 0x234   :  { %v711_v15 = vadd.f32 %v667_v12, %v531_v23 }
 0x235   :  { %v673_v27 = vpop.f32.mrf.mxu1 }
 0x236   :  { %v2505_v40 = vmax.f32 %v711_v15, 0.0  ;;  %v354_v15 = vadd.f32 %v2458_v30, %v176_v13 }
 0x238   :  { %795 = vmatmul.f32.gmra.mxu2 %v2505_v40  ;;  %958 = vmatmul.f32.gmra.mxu0 %v2505_v40 }
 0x239   :  { %v490_v4 = vpop.f32.mrf.mxu3 }
 0x23a   :  { %v532_v6 = vadd.f32 %v490_v4, %v352_v8  ;;  %v177_v8 = vld [vmem:[#allocation10 + $0x30] sm:$0xff] }
 0x23c   :  { %v712_v2 = vadd.f32 %v670_v0, %v532_v6 }
 0x23d   :  { %v676_v56 = vpop.f32.mrf.mxu1 }
 0x23e   :  { %v2510_v36 = vmax.f32 %v712_v2, 0.0  ;;  %v355_v2 = vadd.f32 %v2469_v32, %v177_v8 }
 0x240   :  { %798 = vmatmul.f32.gmra.mxu2 %v2510_v36  ;;  %961 = vmatmul.f32.gmra.mxu0 %v2510_v36 }
 0x241   :  { %v493_v12 = vpop.f32.mrf.mxu3 }
 0x242   :  { %v533_v57 = vadd.f32 %v493_v12, %v353_v52  ;;  %v178_v52 = vld [vmem:[#allocation10 + $0x38] sm:$0xff] }
 0x244   :  { %v713_v25 = vadd.f32 %v673_v27, %v533_v57 }
 0x245   :  { %v679_v19 = vpop.f32.mrf.mxu1 }
 0x246   :  { %v2515_v23 = vmax.f32 %v713_v25, 0.0  ;;  %v356_v25 = vadd.f32 %v2481_v29, %v178_v52 }
 0x248   :  { %801 = vmatmul.f32.gmra.mxu2 %v2515_v23  ;;  %964 = vmatmul.f32.gmra.mxu0 %v2515_v23 }
 0x249   :  { %v496_v0 = vpop.f32.mrf.mxu3 }
 0x24a   :  { %v534_v16 = vadd.f32 %v496_v0, %v354_v15  ;;  %v179_v15 = vld [vmem:[#allocation10 + $0x40] sm:$0xff] }
 0x24c   :  { %v714_v41 = vadd.f32 %v676_v56, %v534_v16 }
 0x24d   :  { %v682_v4 = vpop.f32.mrf.mxu1 }
 0x24e   :  { %v2520_v6 = vmax.f32 %v714_v41, 0.0  ;;  %v357_v41 = vadd.f32 %v2415_v17, %v179_v15  ;;  %v1095_v15 = vld [vmem:[#allocation7 + $0x160] sm:$0xff] }
 0x250   :  { %804 = vmatmul.f32.gmra.mxu2 %v2520_v6  ;;  %967 = vmatmul.f32.gmra.mxu0 %v2520_v6 }
 0x251   :  { %v499_v27 = vpop.f32.mrf.mxu3 }
 0x252   :  { %v535_v20 = vadd.f32 %v499_v27, %v355_v2  ;;  %v180_v2 = vld [vmem:[#allocation10 + $0x48] sm:$0xff] }
 0x254   :  { %v715_v30 = vadd.f32 %v679_v19, %v535_v20 }
 0x255   :  { %v685_v12 = vpop.f32.mrf.mxu1 }
 0x256   :  { %v2525_v57 = vmax.f32 %v715_v30, 0.0  ;;  %v358_v30 = vadd.f32 %v2427_v22, %v180_v2  ;;  %v1093_v2 = vld [vmem:[#allocation7 + $0x150] sm:$0xff] }
 0x258   :  { %807 = vmatmul.f32.gmra.mxu2 %v2525_v57  ;;  %970 = vmatmul.f32.gmra.mxu0 %v2525_v57 }
 0x259   :  { %v502_v56 = vpop.f32.mrf.mxu3 }
 0x25a   :  { %v536_v13 = vadd.f32 %v502_v56, %v356_v25  ;;  %v1097_v25 = vld [vmem:[#allocation7 + $0x170] sm:$0xff] }
 0x25c   :  { %v716_v32 = vadd.f32 %v682_v4, %v536_v13  ;;  %v1098_v4 = vld [vmem:[#allocation7 + $0x178] sm:$0xff]  ;;  %v1096_v13 = vld [vmem:[#allocation7 + $0x168] sm:$0xff] }
 0x25d   :  { %v688_v0 = vpop.f32.mrf.mxu1  ;;  %1099 = vmatpush.msrb.mxu2 %v1098_v4  ;;  %v182_v4 = vld [vmem:[#allocation10 + $0x58] sm:$0xff] }
 0x25e   :  { %v2530_v16 = vmax.f32 %v716_v32, 0.0  ;;  %v181_v32 = vld [vmem:[#allocation10 + $0x50] sm:$0xff] }
 0x25f   :  { %1100 = vmatpush.msrb.mxu2 %v1097_v25  ;;  %v359_v22 = vadd.f32 %v2437_v26, %v181_v32  ;;  %v360_v26 = vadd.f32 %v2450_v48, %v182_v4  ;;  %v1090_v25 = vld [vmem:[#allocation7 + $0x138] sm:$0xff]  ;;  %v1089_v32 = vld [vmem:[#allocation7 + $0x130] sm:$0xff] }
 0x260   :  { %810 = vmatmul.f32.gmra.mxu2 %v2530_v16  ;;  %973 = vmatmul.f32.gmra.mxu0 %v2530_v16 }
 0x261   :  { %v505_v19 = vpop.f32.mrf.mxu3  ;;  %1101 = vmatpush.msrb.mxu2 %v1096_v13 }
 0x262   :  { %v537_v8 = vadd.f32 %v505_v19, %v357_v41  ;;  %v1094_v41 = vld [vmem:[#allocation7 + $0x158] sm:$0xff] }
 0x263   :  { %1102 = vmatpush.msrb.mxu2 %v1095_v15 }
 0x264   :  { %v717_v29 = vadd.f32 %v685_v12, %v537_v8 }
 0x265   :  { %v691_v20 = vpop.f32.mrf.mxu1  ;;  %1103 = vmatpush.msrb.mxu2 %v1094_v41  ;;  %v183_v41 = vld [vmem:[#allocation10 + $0x60] sm:$0xff] }
 0x266   :  { %v2535_v27 = vmax.f32 %v717_v29, 0.0  ;;  %v361_v48 = vadd.f32 %v2461_v45, %v183_v41  ;;  %v185_v41 = vld [vmem:[#allocation10 + $0x70] sm:$0xff] }
 0x267   :  { %1104 = vmatpush.msrb.mxu2 %v1093_v2  ;;  %v1086_v2 = vld [vmem:[#allocation7 + $0x118] sm:$0xff] }
 0x268   :  { %813 = vmatmul.f32.gmra.mxu2 %v2535_v27  ;;  %976 = vmatmul.f32.gmra.mxu0 %v2535_v27 }
 0x269   :  { %v508_v52 = vpop.f32.mrf.mxu3 }
 0x26a   :  { %v538_v17 = vadd.f32 %v508_v52, %v358_v30  ;;  %v1092_v30 = vld [vmem:[#allocation7 + $0x148] sm:$0xff] }
 0x26b   :  { %1105 = vmatpush.msrb.mxu2 %v1092_v30 }
 0x26c   :  { %v718_v56 = vadd.f32 %v688_v0, %v538_v17  ;;  %v1091_v17 = vld [vmem:[#allocation7 + $0x140] sm:$0xff] }
 0x26d   :  { %v694_v8 = vpop.f32.mrf.mxu1  ;;  %1106 = vmatpush.msrb.mxu2 %v1091_v17  ;;  %v1084_v17 = vld [vmem:[#allocation7 + $0x108] sm:$0xff] }
 0x26e   :  { %v2540_v12 = vmax.f32 %v718_v56, 0.0 }
 0x26f   :  { %1107 = vmatpush.msrb.mxu2 %v1090_v25 }
 0x270   :  { %816 = vmatmul.f32.gmra.mxu2 %v2540_v12  ;;  %979 = vmatmul.f32.gmra.mxu0 %v2540_v12 }
 0x271   :  { %v511_v19 = vpop.f32.mrf.mxu3  ;;  %1108 = vmatpush.msrb.mxu2 %v1089_v32 }
 0x272   :  { %v539_v29 = vadd.f32 %v511_v19, %v359_v22  ;;  %v1088_v22 = vld [vmem:[#allocation7 + $0x128] sm:$0xff] }
 0x273   :  { %1109 = vmatpush.msrb.mxu2 %v1088_v22 }
 0x274   :  { %v719_v0 = vadd.f32 %v691_v20, %v539_v29  ;;  %v1087_v29 = vld [vmem:[#allocation7 + $0x120] sm:$0xff] }
 0x275   :  { %v697_v15 = vpop.f32.mrf.mxu1  ;;  %1110 = vmatpush.msrb.mxu2 %v1087_v29 }
 0x276   :  { %v2545_v52 = vmax.f32 %v719_v0, 0.0  ;;  %v1085_v0 = vld [vmem:[#allocation7 + $0x110] sm:$0xff] }
 0x277   :  { %1111 = vmatpush.msrb.mxu2 %v1086_v2 }
 0x278   :  { %819 = vmatmul.f32.gmra.mxu2 %v2545_v52  ;;  %982 = vmatmul.f32.gmra.mxu0 %v2545_v52 }
 0x279   :  { %v514_v56 = vpop.f32.mrf.mxu3  ;;  %1112 = vmatpush.msrb.mxu2 %v1085_v0 }
 0x27a   :  { %v540_v13 = vadd.f32 %v514_v56, %v360_v26  ;;  %v184_v26 = vld [vmem:[#allocation10 + $0x68] sm:$0xff]  ;;  %v1083_v56 = vld [vmem:[#allocation7 + $0x100] sm:$0xff] }
 0x27b   :  { %1113 = vmatpush.msrb.mxu2 %v1084_v17  ;;  %v362_v45 = vadd.f32 %v2473_v63, %v184_v26 }
 0x27c   :  { %v720_v20 = vadd.f32 %v694_v8, %v540_v13 }
 0x27d   :  { %v700_v25 = vpop.f32.mrf.mxu1  ;;  %1114 = vmatpush.msrb.mxu2 %v1083_v56 }
 0x27e   :  { %v2550_v19 = vmax.f32 %v720_v20, 0.0 }
 0x280   :  { %822 = vmatmul.f32.gmra.mxu2 %v2550_v19  ;;  %985 = vmatmul.f32.gmra.mxu0 %v2550_v19 }
 0x281   :  { %v517_v30 = vpop.f32.mrf.mxu3 }
 0x282   :  { %v541_v4 = vadd.f32 %v517_v30, %v361_v48  ;;  %v363_v48 = vadd.f32 %v2483_v33, %v185_v41 }
 0x284   :  { %v721_v8 = vadd.f32 %v697_v15, %v541_v4  ;;  %v186_v4 = vld [vmem:[#allocation10 + $0x78] sm:$0xff] }
 0x285   :  { %v703_v15 = vpop.f32.mrf.mxu1  ;;  %v364_v63 = vadd.f32 %v2492_v60, %v186_v4 }
 0x286   :  { %v2555_v13 = vmax.f32 %v721_v8, 0.0 }
 0x288   :  { %825 = vmatmul.f32.gmra.mxu2 %v2555_v13  ;;  %988 = vmatmul.f32.gmra.mxu0 %v2555_v13 }
 0x289   :  { %v520_v32 = vpop.f32.mrf.mxu3 }
 0x28a   :  { %v542_v20 = vadd.f32 %v520_v32, %v362_v45 }
 0x28c   :  { %v722_v22 = vadd.f32 %v700_v25, %v542_v20 }
 0x28d   :  { %v706_v26 = vpop.f32.mrf.mxu1 }
 0x28e   :  { %v738_v29 = vmax.f32 %v722_v22, 0.0 }
 0x290   :  { %828 = vmatmul.f32.gmra.mxu2 %v738_v29  ;;  %991 = vmatmul.f32.gmra.mxu0 %v738_v29 }
 0x291   :  { %v523_v2 = vpop.f32.mrf.mxu3 }
 0x292   :  { %v543_v0 = vadd.f32 %v523_v2, %v363_v48 }
 0x294   :  { %v723_v30 = vadd.f32 %v703_v15, %v543_v0 }
 0x296   :  { %v739_v8 = vmax.f32 %v723_v30, 0.0 }
 0x298   :  { %831 = vmatmul.f32.gmra.mxu2 %v739_v8  ;;  %994 = vmatmul.f32.gmra.mxu0 %v739_v8 }
 0x299   :  { %v526_v17 = vpop.f32.mrf.mxu3 }
 0x29a   :  { %v544_v56 = vadd.f32 %v526_v17, %v364_v63 }
 0x29c   :  { %v724_v25 = vadd.f32 %v706_v26, %v544_v56 }
 0x29e   :  { %v740_v45 = vmax.f32 %v724_v25, 0.0 }
 0x2a0   :  { %834 = vmatmul.f32.gmra.mxu2 %v740_v45  ;;  %997 = vmatmul.f32.gmra.mxu0 %v740_v45 }
 0x2a5   :  { %v2562_v32 = vpop.f32.mrf.mxu0 }
 0x2a8   :  { %1115 = vmatmul.f32.vlgmr.msrb.gmra.mxu2 %v2495_v10 }
 0x2ab   :  { %v2565_v33 = vpop.f32.mrf.mxu2 }
 0x2ad   :  { %v2567_v20 = vpop.f32.mrf.mxu0 }
 0x2b0   :  { %1118 = vmatmul.f32.gmra.mxu2 %v2500_v59 }
 0x2b3   :  { %v2570_v60 = vpop.f32.mrf.mxu2 }
 0x2b5   :  { %v2572_v22 = vpop.f32.mrf.mxu0 }
 0x2b8   :  { %1121 = vmatmul.f32.gmra.mxu2 %v2505_v40 }
 0x2bb   :  { %v2575_v41 = vpop.f32.mrf.mxu2 }
 0x2bd   :  { %v962_v15 = vpop.f32.mrf.mxu0 }
 0x2c0   :  { %1124 = vmatmul.f32.gmra.mxu2 %v2510_v36 }
 0x2c3   :  { %v2578_v48 = vpop.f32.mrf.mxu2 }
 0x2c5   :  { %v965_v10 = vpop.f32.mrf.mxu0 }
 0x2c8   :  { %1127 = vmatmul.f32.gmra.mxu2 %v2515_v23 }
 0x2cb   :  { %v802_v2 = vpop.f32.mrf.mxu2 }
 0x2cd   :  { %v968_v0 = vpop.f32.mrf.mxu0 }
 0x2d0   :  { %1130 = vmatmul.f32.gmra.mxu2 %v2520_v6 }
 0x2d3   :  { %v805_v59 = vpop.f32.mrf.mxu2 }
 0x2d5   :  { %v971_v30 = vpop.f32.mrf.mxu0 }
 0x2d8   :  { %1133 = vmatmul.f32.gmra.mxu2 %v2525_v57 }
 0x2db   :  { %v808_v4 = vpop.f32.mrf.mxu2 }
 0x2dd   :  { %v974_v40 = vpop.f32.mrf.mxu0 }
 0x2e0   :  { %1136 = vmatmul.f32.gmra.mxu2 %v2530_v16 }
 0x2e3   :  { %v811_v63 = vpop.f32.mrf.mxu2 }
 0x2e5   :  { %v977_v17 = vpop.f32.mrf.mxu0 }
 0x2e8   :  { %1139 = vmatmul.f32.gmra.mxu2 %v2535_v27 }
 0x2eb   :  { %v814_v36 = vpop.f32.mrf.mxu2 }
 0x2ed   :  { %v980_v26 = vpop.f32.mrf.mxu0 }
 0x2f0   :  { %1142 = vmatmul.f32.gmra.mxu2 %v2540_v12 }
 0x2f3   :  { %v817_v23 = vpop.f32.mrf.mxu2 }
 0x2f5   :  { %v983_v56 = vpop.f32.mrf.mxu0 }
 0x2f8   :  { %1145 = vmatmul.f32.gmra.mxu2 %v2545_v52 }
 0x2fb   :  { %v820_v6 = vpop.f32.mrf.mxu2 }
 0x2fd   :  { %v986_v25 = vpop.f32.mrf.mxu0 }
 0x300   :  { %1148 = vmatmul.f32.gmra.mxu2 %v2550_v19 }
 0x303   :  { %v823_v57 = vpop.f32.mrf.mxu2 }
 0x305   :  { %v989_v49 = vpop.f32.mrf.mxu0 }
 0x308   :  { %1151 = vmatmul.f32.gmra.mxu2 %v2555_v13 }
 0x30b   :  { %v826_v16 = vpop.f32.mrf.mxu2 }
 0x30d   :  { %v992_v55 = vpop.f32.mrf.mxu0 }
 0x310   :  { %1154 = vmatmul.f32.gmra.mxu2 %v738_v29  ;;  %v2912_v29 = vld [vmem:[#allocation32_spill] sm:$0xff] }
 0x313   :  { %v829_v27 = vpop.f32.mrf.mxu2 }
 0x315   :  { %v995_v28 = vpop.f32.mrf.mxu0 }
 0x318   :  { %1157 = vmatmul.f32.gmra.mxu2 %v739_v8 }
 0x31b   :  { %v832_v51 = vpop.f32.mrf.mxu2 }
 0x31d   :  { %v998_v12 = vpop.f32.mrf.mxu0 }
 0x31e   :  { %1001 = vmatpush.msra.mxu1 %v998_v12  ;;  %v1283_v12 = vld [vmem:[#allocation8 + $0x30] sm:$0xff] }
 0x320   :  { %1002 = vmatpush.msra.mxu1 %v995_v28  ;;  %1160 = vmatmul.f32.gmra.mxu2 %v740_v45  ;;  %v2913_v45 = vld [vmem:[#allocation33_spill] sm:$0xff] }
 0x322   :  { %1003 = vmatpush.msra.mxu1 %v992_v55 }
 0x323   :  { %v835_v52 = vpop.f32.mrf.mxu2 }
 0x324   :  { %838 = vmatpush.msra.mxu3 %v835_v52  ;;  %1004 = vmatpush.msra.mxu1 %v989_v49  ;;  %v1446_v52 = vld [vmem:[#allocation8 + $0xb0] sm:$0xff] }
 0x326   :  { %839 = vmatpush.msra.mxu3 %v832_v51  ;;  %1005 = vmatpush.msra.mxu1 %v986_v25  ;;  %v1448_v25 = vld [vmem:[#allocation8 + $0xc0] sm:$0xff] }
 0x328   :  { %840 = vmatpush.msra.mxu3 %v829_v27  ;;  %1006 = vmatpush.msra.mxu1 %v983_v56  ;;  %v1449_v56 = vld [vmem:[#allocation8 + $0xc8] sm:$0xff]  ;;  %v1447_v27 = vld [vmem:[#allocation8 + $0xb8] sm:$0xff] }
 0x32a   :  { %841 = vmatpush.msra.mxu3 %v826_v16  ;;  %1007 = vmatpush.msra.mxu1 %v980_v26  ;;  %v1284_v16 = vld [vmem:[#allocation8 + $0x38] sm:$0xff] }
 0x32b   :  { %v2589_v19 = vpop.f32.mrf.mxu2 }
 0x32c   :  { %842 = vmatpush.msra.mxu3 %v823_v57  ;;  %1008 = vmatpush.msra.mxu1 %v977_v17  ;;  %v1287_v17 = vld [vmem:[#allocation8 + $0x50] sm:$0xff] }
 0x32d   :  { %v2917_v57 = vld [vmem:[#allocation37_spill] sm:$0xff] }
 0x32e   :  { %843 = vmatpush.msra.mxu3 %v820_v6  ;;  %1009 = vmatpush.msra.mxu1 %v974_v40  ;;  %v1288_v40 = vld [vmem:[#allocation8 + $0x58] sm:$0xff]  ;;  %v1285_v6 = vld [vmem:[#allocation8 + $0x40] sm:$0xff] }
 0x330   :  { %844 = vmatpush.msra.mxu3 %v817_v23  ;;  %1010 = vmatpush.msra.mxu1 %v971_v30  ;;  %v1452_v30 = vld [vmem:[#allocation8 + $0xe0] sm:$0xff]  ;;  %v1286_v23 = vld [vmem:[#allocation8 + $0x48] sm:$0xff] }
 0x332   :  { %845 = vmatpush.msra.mxu3 %v814_v36  ;;  %1011 = vmatpush.msra.mxu1 %v968_v0  ;;  %v1453_v0 = vld [vmem:[#allocation8 + $0xe8] sm:$0xff]  ;;  %v1450_v36 = vld [vmem:[#allocation8 + $0xd0] sm:$0xff] }
 0x333   :  { %v2591_v55 = vpop.f32.mrf.mxu2 }
 0x334   :  { %846 = vmatpush.msra.mxu3 %v811_v63  ;;  %1012 = vmatpush.msra.mxu1 %v965_v10  ;;  %v1451_v63 = vld [vmem:[#allocation8 + $0xd8] sm:$0xff] }
 0x336   :  { %847 = vmatpush.msra.mxu3 %v808_v4  ;;  %1013 = vmatpush.msra.mxu1 %v962_v15  ;;  %v1291_v15 = vld [vmem:[#allocation8 + $0x70] sm:$0xff]  ;;  %v2916_v4 = vld [vmem:[#allocation36_spill] sm:$0xff] }
 0x338   :  { %848 = vmatpush.msra.mxu3 %v805_v59  ;;  %1014 = vmatpush.msra.mxu1 %v2572_v22  ;;  %v1292_v22 = vld [vmem:[#allocation8 + $0x78] sm:$0xff]  ;;  %v1289_v59 = vld [vmem:[#allocation8 + $0x60] sm:$0xff] }
 0x339   :  { %1293 = vmatpush.msrb.mxu0 %v1292_v22 }
 0x33a   :  { %849 = vmatpush.msra.mxu3 %v802_v2  ;;  %1015 = vmatpush.msra.mxu1 %v2567_v20  ;;  %v1290_v2 = vld [vmem:[#allocation8 + $0x68] sm:$0xff] }
 0x33b   :  { %v2595_v51 = vpop.f32.mrf.mxu2  ;;  %1294 = vmatpush.msrb.mxu0 %v1291_v15 }
 0x33c   :  { %850 = vmatpush.msra.mxu3 %v2578_v48  ;;  %1016 = vmatpush.msra.mxu1 %v2562_v32  ;;  %v1454_v48 = vld [vmem:[#allocation8 + $0xf0] sm:$0xff] }
 0x33d   :  { %1017 = vmatmul.f32.vlgmr.msra.gmra.mxu1 %v2368_v1  ;;  %1295 = vmatpush.msrb.mxu0 %v1290_v2  ;;  %v743_v2 = vld [vmem:[#allocation11 + $0x10] sm:$0xff] }
 0x33e   :  { %851 = vmatpush.msra.mxu3 %v2575_v41  ;;  %v1455_v41 = vld [vmem:[#allocation8 + $0xf8] sm:$0xff] }
 0x33f   :  { %1456 = vmatpush.msra.mxu2 %v1455_v41  ;;  %1296 = vmatpush.msrb.mxu0 %v1289_v59 }
 0x340   :  { %852 = vmatpush.msra.mxu3 %v2570_v60  ;;  %v2915_v60 = vld [vmem:[#allocation35_spill] sm:$0xff] }
 0x341   :  { %1457 = vmatpush.msra.mxu2 %v1454_v48  ;;  %1297 = vmatpush.msrb.mxu0 %v1288_v40 }
 0x342   :  { %853 = vmatpush.msra.mxu3 %v2565_v33  ;;  %v2914_v33 = vld [vmem:[#allocation34_spill] sm:$0xff] }
 0x343   :  { %854 = vmatmul.f32.vlgmr.msra.gmra.mxu3 %v2305_v34  ;;  %v1125_v28 = vpop.f32.mrf.mxu2  ;;  %1458 = vmatpush.msra.mxu2 %v1453_v0 }
 0x344   :  { %1298 = vmatpush.msrb.mxu0 %v1287_v17 }
 0x345   :  { %1020 = vmatmul.f32.gmra.mxu1 %v2375_v3  ;;  %v2904_v3 = vld [vmem:[#allocation43_spill] sm:$0xff]  ;;  %1459 = vmatpush.msra.mxu2 %v1452_v30 }
 0x346   :  { %1299 = vmatpush.msrb.mxu0 %v1286_v23 }
 0x347   :  { %1460 = vmatpush.msra.mxu2 %v1451_v63 }
 0x348   :  { %1300 = vmatpush.msrb.mxu0 %v1285_v6 }
 0x349   :  { %1461 = vmatpush.msra.mxu2 %v1450_v36 }
 0x34a   :  { %1301 = vmatpush.msrb.mxu0 %v1284_v16 }
 0x34b   :  { %857 = vmatmul.f32.gmra.mxu3 %v2311_v38  ;;  %v1128_v49 = vpop.f32.mrf.mxu2  ;;  %1462 = vmatpush.msra.mxu2 %v1449_v56  ;;  %v745_v56 = vld [vmem:[#allocation11 + $0x20] sm:$0xff] }
 0x34c   :  { %1302 = vmatpush.msrb.mxu0 %v1283_v12  ;;  %v746_v12 = vld [vmem:[#allocation11 + $0x28] sm:$0xff] }
 0x34d   :  { %1023 = vmatmul.f32.gmra.mxu1 %v2381_v5  ;;  %v2906_v5 = vld [vmem:[#allocation26_spill] sm:$0xff]  ;;  %1463 = vmatpush.msra.mxu2 %v1448_v25 }
 0x34f   :  { %1464 = vmatpush.msra.mxu2 %v1447_v27 }
 0x351   :  { %1465 = vmatpush.msra.mxu2 %v1446_v52 }
 0x353   :  { %860 = vmatmul.f32.gmra.mxu3 %v2317_v42  ;;  %v1131_v13 = vpop.f32.mrf.mxu2 }
 0x355   :  { %1026 = vmatmul.f32.gmra.mxu1 %v2387_v7 }
 0x35b   :  { %863 = vmatmul.f32.gmra.mxu3 %v2323_v46  ;;  %v1134_v1 = vpop.f32.mrf.mxu2 }
 0x35d   :  { %1029 = vmatmul.f32.gmra.mxu1 %v2393_v9  ;;  %v2907_v9 = vld [vmem:[#allocation27_spill] sm:$0xff] }
 0x363   :  { %866 = vmatmul.f32.gmra.mxu3 %v2329_v50  ;;  %v1137_v34 = vpop.f32.mrf.mxu2 }
 0x365   :  { %1032 = vmatmul.f32.gmra.mxu1 %v2399_v11 }
 0x36b   :  { %869 = vmatmul.f32.gmra.mxu3 %v2335_v54  ;;  %v1140_v38 = vpop.f32.mrf.mxu2 }
 0x36d   :  { %1035 = vmatmul.f32.gmra.mxu1 %v2407_v14  ;;  %v2908_v14 = vld [vmem:[#allocation28_spill] sm:$0xff] }
 0x373   :  { %872 = vmatmul.f32.gmra.mxu3 %v2341_v58  ;;  %v1143_v42 = vpop.f32.mrf.mxu2 }
 0x375   :  { %1038 = vmatmul.f32.gmra.mxu1 %v2417_v18 }
 0x37b   :  { %875 = vmatmul.f32.gmra.mxu3 %v2347_v62  ;;  %v1146_v46 = vpop.f32.mrf.mxu2 }
 0x37d   :  { %1041 = vmatmul.f32.gmra.mxu1 %v2425_v21  ;;  %v2909_v21 = vld [vmem:[#allocation29_spill] sm:$0xff] }
 0x383   :  { %878 = vmatmul.f32.gmra.mxu3 %v2300_v31  ;;  %v1149_v50 = vpop.f32.mrf.mxu2 }
 0x385   :  { %1044 = vmatmul.f32.gmra.mxu1 %v2433_v24 }
 0x38b   :  { %881 = vmatmul.f32.gmra.mxu3 %v2307_v35  ;;  %v1152_v54 = vpop.f32.mrf.mxu2  ;;  %v2901_v35 = vld [vmem:[#allocation23_spill] sm:$0xff] }
 0x38d   :  { %1047 = vmatmul.f32.gmra.mxu1 %v2443_v37  ;;  %v2910_v37 = vld [vmem:[#allocation30_spill] sm:$0xff] }
 0x393   :  { %884 = vmatmul.f32.gmra.mxu3 %v2313_v39  ;;  %v1155_v58 = vpop.f32.mrf.mxu2  ;;  %v2902_v39 = vld [vmem:[#allocation41_spill] sm:$0xff] }
 0x395   :  { %1050 = vmatmul.f32.gmra.mxu1 %v2453_v61 }
 0x39b   :  { %887 = vmatmul.f32.gmra.mxu3 %v2319_v43  ;;  %v1158_v62 = vpop.f32.mrf.mxu2  ;;  %v2903_v43 = vld [vmem:[#allocation24_spill] sm:$0xff] }
 0x39d   :  { %1053 = vmatmul.f32.gmra.mxu1 %v2463_v53  ;;  %v2911_v53 = vld [vmem:[#allocation31_spill] sm:$0xff] }
 0x3a3   :  { %890 = vmatmul.f32.gmra.mxu3 %v2325_v47  ;;  %v1161_v31 = vpop.f32.mrf.mxu2  ;;  %v2905_v47 = vld [vmem:[#allocation25_spill] sm:$0xff] }
 0x3a4   :  { %1164 = vmatpush.msrb.mxu3 %v1161_v31  ;;  %v1440_v31 = vld [vmem:[#allocation8 + $0x80] sm:$0xff] }
 0x3a5   :  { %1056 = vmatmul.f32.gmra.mxu1 %v2471_v44 }
 0x3a6   :  { %1165 = vmatpush.msrb.mxu3 %v1158_v62  ;;  %v1277_v62 = vld [vmem:[#allocation8] sm:$0xff] }
 0x3a8   :  { %1166 = vmatpush.msrb.mxu3 %v1155_v58  ;;  %v1441_v58 = vld [vmem:[#allocation8 + $0x88] sm:$0xff] }
 0x3aa   :  { %1167 = vmatpush.msrb.mxu3 %v1152_v54  ;;  %v1278_v54 = vld [vmem:[#allocation8 + $0x8] sm:$0xff] }
 0x3ab   :  { %893 = vmatmul.f32.gmra.mxu3 %v2901_v35  ;;  %v2919_v35 = vld [vmem:[#allocation39_spill] sm:$0xff] }
 0x3ac   :  { %1168 = vmatpush.msrb.mxu3 %v1149_v50 }
 0x3ad   :  { %1059 = vmatmul.f32.gmra.mxu1 %v2902_v39 }
 0x3ae   :  { %1169 = vmatpush.msrb.mxu3 %v1146_v46  ;;  %v1442_v46 = vld [vmem:[#allocation8 + $0x90] sm:$0xff] }
 0x3b0   :  { %1170 = vmatpush.msrb.mxu3 %v1143_v42  ;;  %v1279_v42 = vld [vmem:[#allocation8 + $0x10] sm:$0xff] }
 0x3b2   :  { %1171 = vmatpush.msrb.mxu3 %v1140_v38 }
 0x3b3   :  { %896 = vmatmul.f32.gmra.mxu3 %v2903_v43 }
 0x3b4   :  { %1172 = vmatpush.msrb.mxu3 %v1137_v34  ;;  %v2918_v34 = vld [vmem:[#allocation38_spill] sm:$0xff] }
 0x3b5   :  { %1062 = vmatmul.f32.gmra.mxu1 %v2904_v3  ;;  %v2920_v3 = vld [vmem:[#allocation40_spill] sm:$0xff] }
 0x3b6   :  { %1173 = vmatpush.msrb.mxu3 %v1134_v1  ;;  %v1443_v1 = vld [vmem:[#allocation8 + $0x98] sm:$0xff] }
 0x3b8   :  { %1174 = vmatpush.msrb.mxu3 %v1131_v13  ;;  %v1280_v13 = vld [vmem:[#allocation8 + $0x18] sm:$0xff] }
 0x3ba   :  { %1175 = vmatpush.msrb.mxu3 %v1128_v49  ;;  %v1444_v49 = vld [vmem:[#allocation8 + $0xa0] sm:$0xff]  ;;  %v1018_v38 = vpop.f32.mrf.mxu1 }
 0x3bb   :  { %899 = vmatmul.f32.gmra.mxu3 %v2905_v47 }
 0x3bc   :  { %1176 = vmatpush.msrb.mxu3 %v1125_v28  ;;  %v1281_v28 = vld [vmem:[#allocation8 + $0x20] sm:$0xff] }
 0x3be   :  { %1177 = vmatpush.msrb.mxu3 %v2595_v51  ;;  %v1445_v51 = vld [vmem:[#allocation8 + $0xa8] sm:$0xff] }
 0x3bf   :  { %1466 = vmatpush.msra.mxu2 %v1445_v51 }
 0x3c0   :  { %1178 = vmatpush.msrb.mxu3 %v2591_v55  ;;  %v1282_v55 = vld [vmem:[#allocation8 + $0x28] sm:$0xff] }
 0x3c1   :  { %1303 = vmatpush.msrb.mxu0 %v1282_v55  ;;  %1467 = vmatpush.msra.mxu2 %v1444_v49 }
 0x3c2   :  { %1179 = vmatpush.msrb.mxu3 %v2589_v19  ;;  %v1021_v39 = vpop.f32.mrf.mxu1 }
 0x3c3   :  { %1180 = vmatmul.f32.vlgmr.msrb.gmra.mxu3 %v2906_v5  ;;  %1304 = vmatpush.msrb.mxu0 %v1281_v28 }
 0x3c4   :  { %1468 = vmatpush.msra.mxu2 %v1443_v1 }
 0x3c5   :  { %1305 = vmatpush.msrb.mxu0 %v1280_v13  ;;  %v747_v13 = vld [vmem:[#allocation11 + $0x30] sm:$0xff] }
 0x3c6   :  { %v2638_v7 = vpop.f32.mrf.mxu3  ;;  %1469 = vmatpush.msra.mxu2 %v1442_v46 }
 0x3c7   :  { %1306 = vmatpush.msrb.mxu0 %v1279_v42 }
 0x3c8   :  { %1470 = vmatpush.msra.mxu2 %v1441_v58 }
 0x3c9   :  { %1307 = vmatpush.msrb.mxu0 %v1278_v54  ;;  %v748_v54 = vld [vmem:[#allocation11 + $0x38] sm:$0xff] }
 0x3ca   :  { %1471 = vmatpush.msra.mxu2 %v1440_v31  ;;  %v1024_v5 = vpop.f32.mrf.mxu1 }
 0x3cb   :  { %1183 = vmatmul.f32.gmra.mxu3 %v2907_v9  ;;  %1308 = vmatpush.msrb.mxu0 %v1277_v62  ;;  %v2921_v9 = vld [vmem:[#allocation42_spill] sm:$0xff] }
 0x3ce   :  { %v2641_v11 = vpop.f32.mrf.mxu3 }
 0x3d3   :  { %1186 = vmatmul.f32.gmra.mxu3 %v2908_v14  ;;  %v741_v14 = vld [vmem:[#allocation11] sm:$0xff] }
 0x3d6   :  { %v2644_v18 = vpop.f32.mrf.mxu3 }
 0x3db   :  { %1189 = vmatmul.f32.gmra.mxu3 %v2909_v21 }
 0x3de   :  { %v2647_v24 = vpop.f32.mrf.mxu3 }
 0x3e3   :  { %1192 = vmatmul.f32.gmra.mxu3 %v2910_v37  ;;  %v903_v37 = vadd.f32 %v2638_v7, %v741_v14  ;;  %v905_v7 = vadd.f32 %v2644_v18, %v743_v2  ;;  %v751_v2 = vld [vmem:[#allocation11 + $0x50] sm:$0xff] }
 0x3e6   :  { %v2650_v61 = vpop.f32.mrf.mxu3 }
 0x3e7   :  { %v907_v16 = vadd.f32 %v2650_v61, %v745_v56 }
 0x3eb   :  { %1195 = vmatmul.f32.gmra.mxu3 %v2911_v53  ;;  %v1027_v53 = vpop.f32.mrf.mxu1 }
 0x3ee   :  { %v2653_v44 = vpop.f32.mrf.mxu3 }
 0x3ef   :  { %v908_v51 = vadd.f32 %v2653_v44, %v746_v12 }
 0x3f3   :  { %1198 = vmatmul.f32.gmra.mxu3 %v2912_v29  ;;  %v1066_v29 = vadd.f32 %v1018_v38, %v903_v37  ;;  %v1030_v15 = vpop.f32.mrf.mxu1 }
 0x3f6   :  { %v2656_v8 = vpop.f32.mrf.mxu3 }
 0x3f7   :  { %v909_v38 = vadd.f32 %v2656_v8, %v747_v13  ;;  %v1608_v13 = vld [vmem:[#allocation8 + $0x128] sm:$0xff] }
 0x3fb   :  { %1201 = vmatmul.f32.gmra.mxu3 %v2913_v45  ;;  %v742_v45 = vld [vmem:[#allocation11 + $0x8] sm:$0xff]  ;;  %v1033_v40 = vpop.f32.mrf.mxu1 }
 0x3fc   :  { %v904_v22 = vadd.f32 %v2641_v11, %v742_v45  ;;  %v1068_v11 = vadd.f32 %v1024_v5, %v905_v7  ;;  %v1071_v61 = vadd.f32 %v1033_v40, %v908_v51  ;;  %v1616_v7 = vld [vmem:[#allocation8 + $0x168] sm:$0xff]  ;;  %v753_v51 = vld [vmem:[#allocation11 + $0x60] sm:$0xff] }
 0x3fe   :  { %v2659_v32 = vpop.f32.mrf.mxu3  ;;  %v1067_v48 = vadd.f32 %v1021_v39, %v904_v22  ;;  %v749_v39 = vld [vmem:[#allocation11 + $0x40] sm:$0xff] }
 0x3ff   :  { %v910_v31 = vadd.f32 %v2659_v32, %v748_v54  ;;  %v754_v54 = vld [vmem:[#allocation11 + $0x68] sm:$0xff] }
 0x403   :  { %1204 = vmatmul.f32.gmra.mxu3 %v2914_v33 }
 0x406   :  { %v2662_v20 = vpop.f32.mrf.mxu3 }
 0x407   :  { %v911_v14 = vadd.f32 %v2662_v20, %v749_v39  ;;  %v1618_v20 = vld [vmem:[#allocation8 + $0x178] sm:$0xff] }
 0x408   :  { %1619 = vmatpush.msra.mxu0 %v1618_v20 }
 0x40b   :  { %1207 = vmatmul.f32.gmra.mxu3 %v2915_v60 }
 0x40e   :  { %v2665_v10 = vpop.f32.mrf.mxu3 }
 0x413   :  { %1210 = vmatmul.f32.gmra.mxu3 %v2916_v4  ;;  %v744_v4 = vld [vmem:[#allocation11 + $0x18] sm:$0xff] }
 0x414   :  { %v906_v36 = vadd.f32 %v2647_v24, %v744_v4  ;;  %v1070_v24 = vadd.f32 %v1030_v15, %v907_v16  ;;  %v1611_v16 = vld [vmem:[#allocation8 + $0x140] sm:$0xff] }
 0x416   :  { %v2668_v26 = vpop.f32.mrf.mxu3  ;;  %v1069_v18 = vadd.f32 %v1027_v53, %v906_v36  ;;  %v750_v53 = vld [vmem:[#allocation11 + $0x48] sm:$0xff]  ;;  %v1613_v36 = vld [vmem:[#allocation8 + $0x150] sm:$0xff] }
 0x41b   :  { %1213 = vmatmul.f32.gmra.mxu3 %v2917_v57  ;;  %v1036_v57 = vpop.f32.mrf.mxu1 }
 0x41c   :  { %v1072_v46 = vadd.f32 %v1036_v57, %v909_v38  ;;  %v1606_v38 = vld [vmem:[#allocation8 + $0x118] sm:$0xff] }
 0x41e   :  { %v2671_v19 = vpop.f32.mrf.mxu3 }
 0x423   :  { %1216 = vmatmul.f32.gmra.mxu3 %v2918_v34  ;;  %v1039_v49 = vpop.f32.mrf.mxu1 }
 0x424   :  { %v1073_v8 = vadd.f32 %v1039_v49, %v910_v31 }
 0x426   :  { %v2674_v50 = vpop.f32.mrf.mxu3 }
 0x42b   :  { %1219 = vmatmul.f32.gmra.mxu3 %v2919_v35  ;;  %v1042_v44 = vpop.f32.mrf.mxu1 }
 0x42c   :  { %v1074_v32 = vadd.f32 %v1042_v44, %v911_v14  ;;  %v1605_v44 = vld [vmem:[#allocation8 + $0x110] sm:$0xff] }
 0x42e   :  { %v2677_v43 = vpop.f32.mrf.mxu3 }
 0x42f   :  { %v916_v39 = vadd.f32 %v2677_v43, %v754_v54  ;;  %v1849_v54 = vld [vmem:[#allocation2 + $0x8] sm:$0xff] }
 0x433   :  { %1222 = vmatmul.f32.gmra.mxu3 %v2920_v3  ;;  %v1045_v3 = vpop.f32.mrf.mxu1 }
 0x436   :  { %v2680_v47 = vpop.f32.mrf.mxu3 }
 0x43b   :  { %1225 = vmatmul.f32.gmra.mxu3 %v2921_v9 }
 0x43e   :  { %v2683_v21 = vpop.f32.mrf.mxu3 }
 0x446   :  { %v1181_v33 = vpop.f32.mrf.mxu3 }
 0x447   :  { %v1229_v60 = vadd.f32 %v1181_v33, %v1066_v29  ;;  %v1048_v33 = vpop.f32.mrf.mxu1 }
 0x449   :  { %v2687_v41 = vmax.f32 %v1229_v60, 0.0  ;;  %v912_v60 = vadd.f32 %v2665_v10, %v750_v53  ;;  %v1615_v10 = vld [vmem:[#allocation8 + $0x160] sm:$0xff] }
 0x44b   :  { %1309 = vmatmul.f32.vlgmr.msrb.gmra.mxu0 %v2687_v41  ;;  %1472 = vmatmul.f32.vlgmr.msra.gmra.mxu2 %v2687_v41  ;;  %v1075_v15 = vadd.f32 %v1045_v3, %v912_v60  ;;  %v756_v60 = vld [vmem:[#allocation11 + $0x78] sm:$0xff] }
 0x44e   :  { %v1184_v0 = vpop.f32.mrf.mxu3 }
 0x44f   :  { %v1230_v59 = vadd.f32 %v1184_v0, %v1067_v48  ;;  %v1617_v48 = vld [vmem:[#allocation8 + $0x170] sm:$0xff]  ;;  %v1051_v40 = vpop.f32.mrf.mxu1 }
 0x450   :  { %1620 = vmatpush.msra.mxu0 %v1617_v48 }
 0x451   :  { %v2692_v30 = vmax.f32 %v1230_v59, 0.0 }
 0x452   :  { %1621 = vmatpush.msra.mxu0 %v1616_v7 }
 0x453   :  { %1312 = vmatmul.f32.gmra.mxu0 %v2692_v30  ;;  %1475 = vmatmul.f32.gmra.mxu2 %v2692_v30 }
 0x454   :  { %1622 = vmatpush.msra.mxu0 %v1615_v10 }
 0x456   :  { %v1187_v63 = vpop.f32.mrf.mxu3 }
 0x457   :  { %v1231_v17 = vadd.f32 %v1187_v63, %v1068_v11  ;;  %v913_v11 = vadd.f32 %v2668_v26, %v751_v2  ;;  %v1614_v63 = vld [vmem:[#allocation8 + $0x158] sm:$0xff]  ;;  %v1054_v12 = vpop.f32.mrf.mxu1 }
 0x458   :  { %1623 = vmatpush.msra.mxu0 %v1614_v63 }
 0x459   :  { %v2697_v23 = vmax.f32 %v1231_v17, 0.0  ;;  %v1076_v17 = vadd.f32 %v1048_v33, %v913_v11 }
 0x45a   :  { %1624 = vmatpush.msra.mxu0 %v1613_v36 }
 0x45b   :  { %1315 = vmatmul.f32.gmra.mxu0 %v2697_v23  ;;  %1478 = vmatmul.f32.gmra.mxu2 %v2697_v23 }
 0x45e   :  { %v1190_v6 = vpop.f32.mrf.mxu3 }
 0x45f   :  { %v1232_v25 = vadd.f32 %v1190_v6, %v1069_v18  ;;  %v752_v18 = vld [vmem:[#allocation11 + $0x58] sm:$0xff] }
 0x460   :  { %v914_v26 = vadd.f32 %v2671_v19, %v752_v18  ;;  %v915_v19 = vadd.f32 %v2674_v50, %v753_v51  ;;  %v1603_v50 = vld [vmem:[#allocation8 + $0x100] sm:$0xff] }
 0x461   :  { %v2702_v27 = vmax.f32 %v1232_v25, 0.0  ;;  %v1612_v25 = vld [vmem:[#allocation8 + $0x148] sm:$0xff] }
 0x462   :  { %1625 = vmatpush.msra.mxu0 %v1612_v25 }
 0x463   :  { %1318 = vmatmul.f32.gmra.mxu0 %v2702_v27  ;;  %1481 = vmatmul.f32.gmra.mxu2 %v2702_v27 }
 0x464   :  { %1626 = vmatpush.msra.mxu0 %v1611_v16 }
 0x466   :  { %v1193_v52 = vpop.f32.mrf.mxu3 }
 0x467   :  { %v1233_v55 = vadd.f32 %v1193_v52, %v1070_v24  ;;  %v1610_v24 = vld [vmem:[#allocation8 + $0x138] sm:$0xff]  ;;  %v1077_v52 = vadd.f32 %v1051_v40, %v914_v26 }
 0x468   :  { %1627 = vmatpush.msra.mxu0 %v1610_v24 }
 0x469   :  { %v2707_v28 = vmax.f32 %v1233_v55, 0.0  ;;  %v1609_v55 = vld [vmem:[#allocation8 + $0x130] sm:$0xff] }
 0x46a   :  { %1628 = vmatpush.msra.mxu0 %v1609_v55 }
 0x46b   :  { %1321 = vmatmul.f32.gmra.mxu0 %v2707_v28  ;;  %1484 = vmatmul.f32.gmra.mxu2 %v2707_v28 }
 0x46c   :  { %1629 = vmatpush.msra.mxu0 %v1608_v13 }
 0x46e   :  { %v1196_v1 = vpop.f32.mrf.mxu3 }
 0x46f   :  { %v1234_v34 = vadd.f32 %v1196_v1, %v1071_v61 }
 0x471   :  { %v2712_v42 = vmax.f32 %v1234_v34, 0.0  ;;  %v1607_v34 = vld [vmem:[#allocation8 + $0x120] sm:$0xff] }
 0x472   :  { %1630 = vmatpush.msra.mxu0 %v1607_v34 }
 0x473   :  { %1324 = vmatmul.f32.gmra.mxu0 %v2712_v42  ;;  %1487 = vmatmul.f32.gmra.mxu2 %v2712_v42 }
 0x474   :  { %1631 = vmatpush.msra.mxu0 %v1606_v38  ;;  %v1847_v38 = vld [vmem:[#allocation2] sm:$0xff] }
 0x476   :  { %v1199_v58 = vpop.f32.mrf.mxu3  ;;  %1632 = vmatpush.msra.mxu0 %v1605_v44 }
 0x477   :  { %v1235_v62 = vadd.f32 %v1199_v58, %v1072_v46  ;;  %v1078_v46 = vadd.f32 %v1054_v12, %v915_v19  ;;  %v1057_v58 = vpop.f32.mrf.mxu1 }
 0x479   :  { %v2717_v35 = vmax.f32 %v1235_v62, 0.0 }
 0x47b   :  { %1327 = vmatmul.f32.gmra.mxu0 %v2717_v35  ;;  %1490 = vmatmul.f32.gmra.mxu2 %v2717_v35 }
 0x47e   :  { %v1202_v5 = vpop.f32.mrf.mxu3 }
 0x47f   :  { %v1236_v9 = vadd.f32 %v1202_v5, %v1073_v8  ;;  %v1604_v8 = vld [vmem:[#allocation8 + $0x108] sm:$0xff]  ;;  %v1079_v5 = vadd.f32 %v1057_v58, %v916_v39  ;;  %v1060_v53 = vpop.f32.mrf.mxu1  ;;  %v1853_v39 = vld [vmem:[#allocation2 + $0x18] sm:$0xff] }
 0x480   :  { %1633 = vmatpush.msra.mxu0 %v1604_v8 }
 0x481   :  { %v2722_v37 = vmax.f32 %v1236_v9, 0.0  ;;  %v755_v9 = vld [vmem:[#allocation11 + $0x70] sm:$0xff] }
 0x482   :  { %1634 = vmatpush.msra.mxu0 %v1603_v50  ;;  %v1852_v50 = vld [vmem:[#allocation2 + $0x90] sm:$0xff] }
 0x483   :  { %1330 = vmatmul.f32.gmra.mxu0 %v2722_v37  ;;  %1493 = vmatmul.f32.gmra.mxu2 %v2722_v37 }
 0x486   :  { %v1205_v29 = vpop.f32.mrf.mxu3 }
 0x487   :  { %v1237_v45 = vadd.f32 %v1205_v29, %v1074_v32  ;;  %v917_v29 = vadd.f32 %v2680_v47, %v755_v9  ;;  %v1063_v2 = vpop.f32.mrf.mxu1  ;;  %v1855_v9 = vld [vmem:[#allocation2 + $0x20] sm:$0xff] }
 0x489   :  { %v2727_v22 = vmax.f32 %v1237_v45, 0.0  ;;  %v1080_v33 = vadd.f32 %v1060_v53, %v917_v29  ;;  %v1857_v53 = vld [vmem:[#allocation2 + $0x28] sm:$0xff] }
 0x48b   :  { %1333 = vmatmul.f32.gmra.mxu0 %v2727_v22  ;;  %1496 = vmatmul.f32.gmra.mxu2 %v2727_v22 }
 0x48e   :  { %v1208_v0 = vpop.f32.mrf.mxu3 }
 0x48f   :  { %v1238_v59 = vadd.f32 %v1208_v0, %v1075_v15  ;;  %v918_v15 = vadd.f32 %v2683_v21, %v756_v60 }
 0x491   :  { %v2732_v4 = vmax.f32 %v1238_v59, 0.0  ;;  %v1081_v0 = vadd.f32 %v1063_v2, %v918_v15  ;;  %v1863_v2 = vld [vmem:[#allocation2 + $0x40] sm:$0xff] }
 0x493   :  { %1336 = vmatmul.f32.gmra.mxu0 %v2732_v4  ;;  %1499 = vmatmul.f32.gmra.mxu2 %v2732_v4 }
 0x496   :  { %v1211_v56 = vpop.f32.mrf.mxu3 }
 0x497   :  { %v1239_v6 = vadd.f32 %v1211_v56, %v1076_v17 }
 0x499   :  { %v2737_v57 = vmax.f32 %v1239_v6, 0.0 }
 0x49b   :  { %1339 = vmatmul.f32.gmra.mxu0 %v2737_v57  ;;  %1502 = vmatmul.f32.gmra.mxu2 %v2737_v57 }
 0x49e   :  { %v1214_v49 = vpop.f32.mrf.mxu3 }
 0x49f   :  { %v1240_v61 = vadd.f32 %v1214_v49, %v1077_v52 }
 0x4a1   :  { %v2742_v1 = vmax.f32 %v1240_v61, 0.0 }
 0x4a3   :  { %1342 = vmatmul.f32.gmra.mxu0 %v2742_v1  ;;  %1505 = vmatmul.f32.gmra.mxu2 %v2742_v1 }
 0x4a6   :  { %v1217_v62 = vpop.f32.mrf.mxu3 }
 0x4a7   :  { %v1241_v31 = vadd.f32 %v1217_v62, %v1078_v46  ;;  %v1848_v46 = vld [vmem:[#allocation2 + $0x80] sm:$0xff]  ;;  %v1850_v62 = vld [vmem:[#allocation2 + $0x88] sm:$0xff] }
 0x4a9   :  { %v2747_v3 = vmax.f32 %v1241_v31, 0.0  ;;  %v1851_v31 = vld [vmem:[#allocation2 + $0x10] sm:$0xff] }
 0x4ab   :  { %1345 = vmatmul.f32.gmra.mxu0 %v2747_v3  ;;  %1508 = vmatmul.f32.gmra.mxu2 %v2747_v3 }
 0x4ae   :  { %v1220_v14 = vpop.f32.mrf.mxu3 }
 0x4af   :  { %v1242_v32 = vadd.f32 %v1220_v14, %v1079_v5  ;;  %v1854_v5 = vld [vmem:[#allocation2 + $0x98] sm:$0xff] }
 0x4b1   :  { %v1258_v45 = vmax.f32 %v1242_v32, 0.0  ;;  %v1856_v32 = vld [vmem:[#allocation2 + $0xa0] sm:$0xff] }
 0x4b3   :  { %1348 = vmatmul.f32.gmra.mxu0 %v1258_v45  ;;  %1511 = vmatmul.f32.gmra.mxu2 %v1258_v45 }
 0x4b6   :  { %v1223_v43 = vpop.f32.mrf.mxu3 }
 0x4b7   :  { %v1243_v20 = vadd.f32 %v1223_v43, %v1080_v33  ;;  %v1859_v33 = vld [vmem:[#allocation2 + $0x30] sm:$0xff] }
 0x4b8   :  { %v1860_v43 = vld [vmem:[#allocation2 + $0xb0] sm:$0xff] }
 0x4b9   :  { %v1259_v48 = vmax.f32 %v1243_v20, 0.0  ;;  %v1861_v20 = vld [vmem:[#allocation2 + $0x38] sm:$0xff] }
 0x4bb   :  { %1351 = vmatmul.f32.gmra.mxu0 %v1259_v48  ;;  %1514 = vmatmul.f32.gmra.mxu2 %v1259_v48 }
 0x4be   :  { %v1226_v59 = vpop.f32.mrf.mxu3 }
 0x4bf   :  { %v1244_v7 = vadd.f32 %v1226_v59, %v1081_v0  ;;  %v1864_v59 = vld [vmem:[#allocation2 + $0xc0] sm:$0xff] }
 0x4c1   :  { %v1260_v11 = vmax.f32 %v1244_v7, 0.0  ;;  %v1865_v7 = vld [vmem:[#allocation2 + $0x48] sm:$0xff] }
 0x4c3   :  { %1354 = vmatmul.f32.gmra.mxu0 %v1260_v11  ;;  %1517 = vmatmul.f32.gmra.mxu2 %v1260_v11 }
 0x4c8   :  { %v2753_v47 = vpop.f32.mrf.mxu0 }
 0x4cb   :  { %1635 = vmatmul.f32.vlgmr.msra.gmra.mxu0 %v2687_v41 }
 0x4ce   :  { %v2756_v10 = vpop.f32.mrf.mxu2 }
 0x4d0   :  { %v2758_v40 = vpop.f32.mrf.mxu0 }
 0x4d3   :  { %1638 = vmatmul.f32.gmra.mxu0 %v2692_v30 }
 0x4d6   :  { %v2761_v21 = vpop.f32.mrf.mxu2 }
 0x4d8   :  { %v2763_v63 = vpop.f32.mrf.mxu0 }
 0x4db   :  { %1641 = vmatmul.f32.gmra.mxu0 %v2697_v23 }
 0x4de   :  { %v2766_v17 = vpop.f32.mrf.mxu2 }
 0x4e0   :  { %v1319_v36 = vpop.f32.mrf.mxu0 }
 0x4e3   :  { %1644 = vmatmul.f32.gmra.mxu0 %v2702_v27 }
 0x4e6   :  { %v2769_v18 = vpop.f32.mrf.mxu2 }
 0x4e8   :  { %v1322_v41 = vpop.f32.mrf.mxu0 }
 0x4eb   :  { %1647 = vmatmul.f32.gmra.mxu0 %v2707_v28 }
 0x4ee   :  { %v1485_v56 = vpop.f32.mrf.mxu2 }
 0x4f0   :  { %v1325_v6 = vpop.f32.mrf.mxu0 }
 0x4f3   :  { %1650 = vmatmul.f32.gmra.mxu0 %v2712_v42 }
 0x4f6   :  { %v1488_v30 = vpop.f32.mrf.mxu2 }
 0x4f8   :  { %v1328_v25 = vpop.f32.mrf.mxu0 }
 0x4fb   :  { %1653 = vmatmul.f32.gmra.mxu0 %v2717_v35 }
 0x4fe   :  { %v1491_v26 = vpop.f32.mrf.mxu2 }
 0x500   :  { %v1331_v23 = vpop.f32.mrf.mxu0 }
 0x503   :  { %1656 = vmatmul.f32.gmra.mxu0 %v2722_v37 }
 0x506   :  { %v1494_v16 = vpop.f32.mrf.mxu2 }
 0x508   :  { %v1334_v24 = vpop.f32.mrf.mxu0 }
 0x50b   :  { %1659 = vmatmul.f32.gmra.mxu0 %v2727_v22 }
 0x50e   :  { %v1497_v27 = vpop.f32.mrf.mxu2 }
 0x510   :  { %v1337_v12 = vpop.f32.mrf.mxu0 }
 0x513   :  { %1662 = vmatmul.f32.gmra.mxu0 %v2732_v4 }
 0x516   :  { %v1500_v28 = vpop.f32.mrf.mxu2 }
 0x518   :  { %v1340_v52 = vpop.f32.mrf.mxu0 }
 0x51b   :  { %1665 = vmatmul.f32.gmra.mxu0 %v2737_v57 }
 0x51e   :  { %v1503_v42 = vpop.f32.mrf.mxu2 }
 0x520   :  { %v1343_v55 = vpop.f32.mrf.mxu0 }
 0x523   :  { %1668 = vmatmul.f32.gmra.mxu0 %v2742_v1 }
 0x526   :  { %v1506_v35 = vpop.f32.mrf.mxu2 }
 0x528   :  { %v1346_v51 = vpop.f32.mrf.mxu0 }
 0x52b   :  { %1671 = vmatmul.f32.gmra.mxu0 %v2747_v3 }
 0x52e   :  { %v1509_v37 = vpop.f32.mrf.mxu2 }
 0x530   :  { %v1349_v49 = vpop.f32.mrf.mxu0 }
 0x533   :  { %1674 = vmatmul.f32.gmra.mxu0 %v1258_v45  ;;  %v1858_v45 = vld [vmem:[#allocation2 + $0xa8] sm:$0xff] }
 0x536   :  { %v1512_v22 = vpop.f32.mrf.mxu2 }
 0x538   :  { %v1352_v61 = vpop.f32.mrf.mxu0 }
 0x53b   :  { %1677 = vmatmul.f32.gmra.mxu0 %v1259_v48  ;;  %v1862_v48 = vld [vmem:[#allocation2 + $0xb8] sm:$0xff] }
 0x53e   :  { %v1515_v13 = vpop.f32.mrf.mxu2 }
 0x540   :  { %v1355_v4 = vpop.f32.mrf.mxu0 }
 0x541   :  { %1358 = vmatpush.msrb.mxu1 %v1355_v4 }
 0x543   :  { %1359 = vmatpush.msrb.mxu1 %v1352_v61  ;;  %1680 = vmatmul.f32.gmra.mxu0 %v1260_v11 }
 0x545   :  { %1360 = vmatpush.msrb.mxu1 %v1349_v49 }
 0x546   :  { %v1518_v57 = vpop.f32.mrf.mxu2 }
 0x547   :  { %1361 = vmatpush.msrb.mxu1 %v1346_v51  ;;  %1521 = vmatpush.msra.mxu3 %v1518_v57  ;;  %v1886_v57 = vld [vmem:[#allocation2 + $0x138] sm:$0xff] }
 0x548   :  { %v2780_v19 = vpop.f32.mrf.mxu0 }
 0x549   :  { %1362 = vmatpush.msrb.mxu1 %v1343_v55  ;;  %1522 = vmatpush.msra.mxu3 %v1515_v13  ;;  %v1885_v13 = vld [vmem:[#allocation2 + $0x130] sm:$0xff] }
 0x54b   :  { %1363 = vmatpush.msrb.mxu1 %v1340_v52  ;;  %1523 = vmatpush.msra.mxu3 %v1512_v22  ;;  %v1884_v22 = vld [vmem:[#allocation2 + $0x128] sm:$0xff] }
 0x54d   :  { %1364 = vmatpush.msrb.mxu1 %v1337_v12  ;;  %1524 = vmatpush.msra.mxu3 %v1509_v37  ;;  %v1883_v37 = vld [vmem:[#allocation2 + $0x120] sm:$0xff] }
 0x54f   :  { %1365 = vmatpush.msrb.mxu1 %v1334_v24  ;;  %1525 = vmatpush.msra.mxu3 %v1506_v35  ;;  %v1878_v24 = vld [vmem:[#allocation2 + $0xf8] sm:$0xff] }
 0x550   :  { %v2782_v1 = vpop.f32.mrf.mxu0  ;;  %v1882_v35 = vld [vmem:[#allocation2 + $0x118] sm:$0xff] }
 0x551   :  { %1366 = vmatpush.msrb.mxu1 %v1331_v23  ;;  %1526 = vmatpush.msra.mxu3 %v1503_v42  ;;  %v1877_v23 = vld [vmem:[#allocation2 + $0x78] sm:$0xff]  ;;  %v1881_v42 = vld [vmem:[#allocation2 + $0x110] sm:$0xff] }
 0x553   :  { %1367 = vmatpush.msrb.mxu1 %v1328_v25  ;;  %1527 = vmatpush.msra.mxu3 %v1500_v28  ;;  %v1875_v25 = vld [vmem:[#allocation2 + $0x70] sm:$0xff]  ;;  %v1880_v28 = vld [vmem:[#allocation2 + $0x108] sm:$0xff] }
 0x555   :  { %1368 = vmatpush.msrb.mxu1 %v1325_v6  ;;  %1528 = vmatpush.msra.mxu3 %v1497_v27  ;;  %v1873_v6 = vld [vmem:[#allocation2 + $0x68] sm:$0xff]  ;;  %v1879_v27 = vld [vmem:[#allocation2 + $0x100] sm:$0xff] }
 0x557   :  { %1369 = vmatpush.msrb.mxu1 %v1322_v41  ;;  %1529 = vmatpush.msra.mxu3 %v1494_v16 }
 0x558   :  { %v2784_v34 = vpop.f32.mrf.mxu0 }
 0x559   :  { %1370 = vmatpush.msrb.mxu1 %v1319_v36  ;;  %1530 = vmatpush.msra.mxu3 %v1491_v26  ;;  %v1870_v36 = vld [vmem:[#allocation2 + $0xd8] sm:$0xff]  ;;  %v1876_v26 = vld [vmem:[#allocation2 + $0xf0] sm:$0xff] }
 0x55b   :  { %1371 = vmatpush.msrb.mxu1 %v2763_v63  ;;  %1531 = vmatpush.msra.mxu3 %v1488_v30  ;;  %v1869_v63 = vld [vmem:[#allocation2 + $0x58] sm:$0xff]  ;;  %v1874_v30 = vld [vmem:[#allocation2 + $0xe8] sm:$0xff] }
 0x55d   :  { %1372 = vmatpush.msrb.mxu1 %v2758_v40  ;;  %1532 = vmatpush.msra.mxu3 %v1485_v56  ;;  %v1872_v56 = vld [vmem:[#allocation2 + $0xe0] sm:$0xff] }
 0x55f   :  { %1373 = vmatpush.msrb.mxu1 %v2753_v47  ;;  %1533 = vmatpush.msra.mxu3 %v2769_v18  ;;  %v1866_v47 = vld [vmem:[#allocation2 + $0xc8] sm:$0xff]  ;;  %v1871_v18 = vld [vmem:[#allocation2 + $0x60] sm:$0xff] }
 0x560   :  { %1374 = vmatmul.f32.vlgmr.msrb.gmra.mxu1 %v1847_v38  ;;  %v2790_v44 = vpop.f32.mrf.mxu0  ;;  %v1888_v38 = vld [vmem:[#allocation2 + $0x148] sm:$0xff] }
 0x561   :  { %1534 = vmatpush.msra.mxu3 %v2766_v17 }
 0x563   :  { %1535 = vmatpush.msra.mxu3 %v2761_v21  ;;  %v1868_v21 = vld [vmem:[#allocation2 + $0xd0] sm:$0xff] }
 0x565   :  { %1536 = vmatpush.msra.mxu3 %v2756_v10  ;;  %v1867_v10 = vld [vmem:[#allocation2 + $0x50] sm:$0xff] }
 0x566   :  { %1537 = vmatmul.f32.vlgmr.msra.gmra.mxu3 %v1848_v46  ;;  %v1889_v46 = vld [vmem:[#allocation2 + $0x150] sm:$0xff] }
 0x568   :  { %1377 = vmatmul.f32.gmra.mxu1 %v1849_v54  ;;  %v2795_v58 = vpop.f32.mrf.mxu0 }
 0x56e   :  { %1540 = vmatmul.f32.gmra.mxu3 %v1850_v62 }
 0x570   :  { %1380 = vmatmul.f32.gmra.mxu1 %v1851_v31  ;;  %v2797_v8 = vpop.f32.mrf.mxu0 }
 0x576   :  { %1543 = vmatmul.f32.gmra.mxu3 %v1852_v50 }
 0x578   :  { %1383 = vmatmul.f32.gmra.mxu1 %v1853_v39  ;;  %v1654_v3 = vpop.f32.mrf.mxu0 }
 0x57e   :  { %1546 = vmatmul.f32.gmra.mxu3 %v1854_v5 }
 0x580   :  { %1386 = vmatmul.f32.gmra.mxu1 %v1855_v9  ;;  %v1657_v14 = vpop.f32.mrf.mxu0 }
 0x586   :  { %1549 = vmatmul.f32.gmra.mxu3 %v1856_v32 }
 0x588   :  { %1389 = vmatmul.f32.gmra.mxu1 %v1857_v53  ;;  %v1660_v29 = vpop.f32.mrf.mxu0  ;;  %v1261_v53 = vld [vmem:[#allocation13] sm:$0xff] }
 0x58e   :  { %1552 = vmatmul.f32.gmra.mxu3 %v1858_v45 }
 0x590   :  { %1392 = vmatmul.f32.gmra.mxu1 %v1859_v33  ;;  %v1663_v60 = vpop.f32.mrf.mxu0 }
 0x596   :  { %1555 = vmatmul.f32.gmra.mxu3 %v1860_v43 }
 0x598   :  { %1395 = vmatmul.f32.gmra.mxu1 %v1861_v20  ;;  %v1666_v15 = vpop.f32.mrf.mxu0 }
 0x59e   :  { %1558 = vmatmul.f32.gmra.mxu3 %v1862_v48 }
 0x5a0   :  { %1398 = vmatmul.f32.gmra.mxu1 %v1863_v2  ;;  %v1669_v0 = vpop.f32.mrf.mxu0 }
 0x5a6   :  { %1561 = vmatmul.f32.gmra.mxu3 %v1864_v59 }
 0x5a8   :  { %1401 = vmatmul.f32.gmra.mxu1 %v1865_v7  ;;  %v1672_v11 = vpop.f32.mrf.mxu0 }
 0x5ae   :  { %1564 = vmatmul.f32.gmra.mxu3 %v1866_v47 }
 0x5b0   :  { %1404 = vmatmul.f32.gmra.mxu1 %v1867_v10  ;;  %v1675_v40 = vpop.f32.mrf.mxu0 }
 0x5b6   :  { %1567 = vmatmul.f32.gmra.mxu3 %v1868_v21 }
 0x5b8   :  { %1407 = vmatmul.f32.gmra.mxu1 %v1869_v63  ;;  %v1678_v17 = vpop.f32.mrf.mxu0 }
 0x5be   :  { %1570 = vmatmul.f32.gmra.mxu3 %v1870_v36 }
 0x5c0   :  { %1410 = vmatmul.f32.gmra.mxu1 %v1871_v18  ;;  %v1681_v41 = vpop.f32.mrf.mxu0 }
 0x5c1   :  { %1684 = vmatpush.msra.mxu1 %v1681_v41 }
 0x5c3   :  { %1685 = vmatpush.msra.mxu1 %v1678_v17  ;;  %v1264_v17 = vld [vmem:[#allocation13 + $0x18] sm:$0xff] }
 0x5c5   :  { %1686 = vmatpush.msra.mxu1 %v1675_v40 }
 0x5c6   :  { %1573 = vmatmul.f32.gmra.mxu3 %v1872_v56 }
 0x5c7   :  { %1687 = vmatpush.msra.mxu1 %v1672_v11  ;;  %v1263_v11 = vld [vmem:[#allocation13 + $0x10] sm:$0xff] }
 0x5c8   :  { %1413 = vmatmul.f32.gmra.mxu1 %v1873_v6  ;;  %v1265_v6 = vld [vmem:[#allocation13 + $0x20] sm:$0xff] }
 0x5c9   :  { %1688 = vmatpush.msra.mxu1 %v1669_v0 }
 0x5cb   :  { %1689 = vmatpush.msra.mxu1 %v1666_v15  ;;  %v1262_v15 = vld [vmem:[#allocation13 + $0x8] sm:$0xff] }
 0x5cd   :  { %1690 = vmatpush.msra.mxu1 %v1663_v60 }
 0x5ce   :  { %1576 = vmatmul.f32.gmra.mxu3 %v1874_v30 }
 0x5cf   :  { %1691 = vmatpush.msra.mxu1 %v1660_v29  ;;  %v1894_v29 = vld [vmem:[#allocation2 + $0x178] sm:$0xff] }
 0x5d0   :  { %1416 = vmatmul.f32.gmra.mxu1 %v1875_v25 }
 0x5d1   :  { %1692 = vmatpush.msra.mxu1 %v1657_v14  ;;  %v1893_v14 = vld [vmem:[#allocation2 + $0x170] sm:$0xff] }
 0x5d3   :  { %1693 = vmatpush.msra.mxu1 %v1654_v3  ;;  %v1892_v3 = vld [vmem:[#allocation2 + $0x168] sm:$0xff] }
 0x5d5   :  { %1694 = vmatpush.msra.mxu1 %v2797_v8  ;;  %v1891_v8 = vld [vmem:[#allocation2 + $0x160] sm:$0xff] }
 0x5d6   :  { %1579 = vmatmul.f32.gmra.mxu3 %v1876_v26 }
 0x5d7   :  { %1695 = vmatpush.msra.mxu1 %v2795_v58  ;;  %v1890_v58 = vld [vmem:[#allocation2 + $0x158] sm:$0xff] }
 0x5d8   :  { %1419 = vmatmul.f32.gmra.mxu1 %v1877_v23 }
 0x5d9   :  { %1696 = vmatpush.msra.mxu1 %v2790_v44 }
 0x5db   :  { %1697 = vmatpush.msra.mxu1 %v2784_v34 }
 0x5dd   :  { %v1375_v16 = vpop.f32.mrf.mxu1  ;;  %1698 = vmatpush.msra.mxu1 %v2782_v1  ;;  %v1887_v1 = vld [vmem:[#allocation2 + $0x140] sm:$0xff] }
 0x5de   :  { %1582 = vmatmul.f32.gmra.mxu3 %v1878_v24  ;;  %v1423_v33 = vadd.f32 %v1375_v16, %v1261_v53  ;;  %v1266_v24 = vld [vmem:[#allocation13 + $0x28] sm:$0xff] }
 0x5df   :  { %1699 = vmatpush.msra.mxu1 %v2780_v19 }
 0x5e0   :  { %1700 = vmatmul.f32.vlgmr.msra.gmra.mxu1 %v1879_v27 }
 0x5e5   :  { %v1378_v12 = vpop.f32.mrf.mxu1 }
 0x5e6   :  { %v1424_v48 = vadd.f32 %v1378_v12, %v1262_v15 }
 0x5e8   :  { %1703 = vmatmul.f32.gmra.mxu1 %v1880_v28 }
 0x5e9   :  { %v1538_v62 = vpop.f32.mrf.mxu3 }
 0x5ea   :  { %v1586_v60 = vadd.f32 %v1538_v62, %v1423_v33 }
 0x5ed   :  { %v1381_v52 = vpop.f32.mrf.mxu1 }
 0x5ee   :  { %v1425_v47 = vadd.f32 %v1381_v52, %v1263_v11 }
 0x5f0   :  { %1706 = vmatmul.f32.gmra.mxu1 %v1881_v42 }
 0x5f1   :  { %v1541_v39 = vpop.f32.mrf.mxu3 }
 0x5f2   :  { %v1587_v0 = vadd.f32 %v1541_v39, %v1424_v48 }
 0x5f5   :  { %v2805_v55 = vpop.f32.mrf.mxu1 }
 0x5f6   :  { %v1426_v36 = vadd.f32 %v2805_v55, %v1264_v17  ;;  %v1267_v55 = vld [vmem:[#allocation13 + $0x30] sm:$0xff] }
 0x5f8   :  { %1709 = vmatmul.f32.gmra.mxu1 %v1882_v35 }
 0x5f9   :  { %v1544_v9 = vpop.f32.mrf.mxu3 }
 0x5fa   :  { %v1588_v10 = vadd.f32 %v1544_v9, %v1425_v47 }
 0x5fd   :  { %v2807_v51 = vpop.f32.mrf.mxu1 }
 0x5fe   :  { %v1427_v25 = vadd.f32 %v2807_v51, %v1265_v6  ;;  %v1268_v51 = vld [vmem:[#allocation13 + $0x38] sm:$0xff] }
 0x600   :  { %1712 = vmatmul.f32.gmra.mxu1 %v1883_v37 }
 0x601   :  { %v1547_v45 = vpop.f32.mrf.mxu3 }
 0x602   :  { %v1589_v18 = vadd.f32 %v1547_v45, %v1426_v36 }
 0x605   :  { %v2809_v49 = vpop.f32.mrf.mxu1 }
 0x606   :  { %v1428_v12 = vadd.f32 %v2809_v49, %v1266_v24  ;;  %v1269_v49 = vld [vmem:[#allocation13 + $0x40] sm:$0xff] }
 0x608   :  { %1715 = vmatmul.f32.gmra.mxu1 %v1884_v22 }
 0x609   :  { %v1550_v2 = vpop.f32.mrf.mxu3 }
 0x60a   :  { %v1590_v26 = vadd.f32 %v1550_v2, %v1427_v25 }
 0x60d   :  { %v2811_v61 = vpop.f32.mrf.mxu1 }
 0x60e   :  { %v1429_v35 = vadd.f32 %v2811_v61, %v1267_v55  ;;  %v1270_v61 = vld [vmem:[#allocation13 + $0x48] sm:$0xff] }
 0x610   :  { %1718 = vmatmul.f32.gmra.mxu1 %v1885_v13 }
 0x611   :  { %v1553_v40 = vpop.f32.mrf.mxu3 }
 0x612   :  { %v1591_v28 = vadd.f32 %v1553_v40, %v1428_v12 }
 0x615   :  { %v2813_v4 = vpop.f32.mrf.mxu1 }
 0x618   :  { %1721 = vmatmul.f32.gmra.mxu1 %v1886_v57 }
 0x619   :  { %v1556_v30 = vpop.f32.mrf.mxu3 }
 0x61a   :  { %v1592_v22 = vadd.f32 %v1556_v30, %v1429_v35 }
 0x61d   :  { %v2815_v19 = vpop.f32.mrf.mxu1 }
 0x620   :  { %1724 = vmatmul.f32.gmra.mxu1 %v1887_v1  ;;  %v1430_v1 = vadd.f32 %v2813_v4, %v1268_v51  ;;  %v1271_v4 = vld [vmem:[#allocation13 + $0x50] sm:$0xff] }
 0x621   :  { %v1559_v27 = vpop.f32.mrf.mxu3 }
 0x625   :  { %v2817_v34 = vpop.f32.mrf.mxu1 }
 0x626   :  { %v1432_v53 = vadd.f32 %v2817_v34, %v1270_v61  ;;  %v1273_v34 = vld [vmem:[#allocation13 + $0x60] sm:$0xff] }
 0x628   :  { %1727 = vmatmul.f32.gmra.mxu1 %v1888_v38  ;;  %v1593_v38 = vadd.f32 %v1559_v27, %v1430_v1 }
 0x629   :  { %v1562_v37 = vpop.f32.mrf.mxu3 }
 0x62d   :  { %v2819_v44 = vpop.f32.mrf.mxu1 }
 0x630   :  { %1730 = vmatmul.f32.gmra.mxu1 %v1889_v46 }
 0x631   :  { %v1565_v46 = vpop.f32.mrf.mxu3 }
 0x635   :  { %v2821_v54 = vpop.f32.mrf.mxu1 }
 0x638   :  { %1733 = vmatmul.f32.gmra.mxu1 %v1890_v58 }
 0x63d   :  { %v2823_v31 = vpop.f32.mrf.mxu1 }
 0x63e   :  { %v1435_v47 = vadd.f32 %v2823_v31, %v1273_v34  ;;  %v1276_v31 = vld [vmem:[#allocation13 + $0x78] sm:$0xff] }
 0x640   :  { %1736 = vmatmul.f32.gmra.mxu1 %v1891_v8  ;;  %v1431_v8 = vadd.f32 %v2815_v19, %v1269_v49  ;;  %v1272_v19 = vld [vmem:[#allocation13 + $0x58] sm:$0xff] }
 0x641   :  { %v1434_v2 = vadd.f32 %v2821_v54, %v1272_v19  ;;  %v1275_v54 = vld [vmem:[#allocation13 + $0x70] sm:$0xff] }
 0x642   :  { %v1594_v39 = vadd.f32 %v1562_v37, %v1431_v8 }
 0x645   :  { %v2825_v50 = vpop.f32.mrf.mxu1 }
 0x648   :  { %1739 = vmatmul.f32.gmra.mxu1 %v1892_v3 }
 0x64d   :  { %v2827_v5 = vpop.f32.mrf.mxu1 }
 0x64e   :  { %v1437_v6 = vadd.f32 %v2827_v5, %v1275_v54 }
 0x650   :  { %1742 = vmatmul.f32.gmra.mxu1 %v1893_v14  ;;  %v1568_v14 = vpop.f32.mrf.mxu3 }
 0x655   :  { %v2829_v32 = vpop.f32.mrf.mxu1 }
 0x658   :  { %1745 = vmatmul.f32.gmra.mxu1 %v1894_v29  ;;  %v1595_v29 = vadd.f32 %v1565_v46, %v1432_v53 }
 0x65d   :  { %v1701_v43 = vpop.f32.mrf.mxu1 }
 0x65e   :  { %v1749_v20 = vadd.f32 %v1701_v43, %v1586_v60  ;;  %v1571_v60 = vpop.f32.mrf.mxu3  ;;  %v1433_v43 = vadd.f32 %v2819_v44, %v1271_v4  ;;  %v1274_v44 = vld [vmem:[#allocation13 + $0x68] sm:$0xff] }
 0x65f   :  { %v1436_v17 = vadd.f32 %v2825_v50, %v1274_v44 }
 0x660   :  { %1765 = vst [vmem:[#allocation16] sm:$0xff] %v1749_v20  ;;  %v1596_v20 = vadd.f32 %v1568_v14, %v1433_v43 }
 0x665   :  { %v1704_v59 = vpop.f32.mrf.mxu1 }
 0x666   :  { %v1750_v7 = vadd.f32 %v1704_v59, %v1587_v0  ;;  %v1574_v0 = vpop.f32.mrf.mxu3  ;;  %v1597_v59 = vadd.f32 %v1571_v60, %v1434_v2 }
 0x668   :  { %1766 = vst [vmem:[#allocation16 + $0x8] sm:$0xff] %v1750_v7 }
 0x66d   :  { %v1707_v21 = vpop.f32.mrf.mxu1 }
 0x66e   :  { %v1751_v63 = vadd.f32 %v1707_v21, %v1588_v10  ;;  %v1598_v10 = vadd.f32 %v1574_v0, %v1435_v47  ;;  %v1577_v40 = vpop.f32.mrf.mxu3 }
 0x66f   :  { %v1599_v36 = vadd.f32 %v1577_v40, %v1436_v17 }
 0x670   :  { %1767 = vst [vmem:[#allocation16 + $0x10] sm:$0xff] %v1751_v63 }
 0x675   :  { %v1710_v41 = vpop.f32.mrf.mxu1 }
 0x676   :  { %v1752_v56 = vadd.f32 %v1710_v41, %v1589_v18 }
 0x678   :  { %1768 = vst [vmem:[#allocation16 + $0x18] sm:$0xff] %v1752_v56  ;;  %v1580_v56 = vpop.f32.mrf.mxu3 }
 0x679   :  { %v1600_v30 = vadd.f32 %v1580_v56, %v1437_v6 }
 0x67d   :  { %v1713_v23 = vpop.f32.mrf.mxu1 }
 0x67e   :  { %v1753_v16 = vadd.f32 %v1713_v23, %v1590_v26 }
 0x680   :  { %1769 = vst [vmem:[#allocation16 + $0x20] sm:$0xff] %v1753_v16  ;;  %v1583_v23 = vpop.f32.mrf.mxu3  ;;  %v1438_v16 = vadd.f32 %v2829_v32, %v1276_v31 }
 0x682   :  { %v1601_v50 = vadd.f32 %v1583_v23, %v1438_v16 }
 0x685   :  { %v1716_v52 = vpop.f32.mrf.mxu1 }
 0x686   :  { %v1754_v42 = vadd.f32 %v1716_v52, %v1591_v28 }
 0x688   :  { %1770 = vst [vmem:[#allocation16 + $0x28] sm:$0xff] %v1754_v42 }
 0x68d   :  { %v1719_v13 = vpop.f32.mrf.mxu1 }
 0x68e   :  { %v1755_v57 = vadd.f32 %v1719_v13, %v1592_v22 }
 0x690   :  { %1771 = vst [vmem:[#allocation16 + $0x30] sm:$0xff] %v1755_v57 }
 0x695   :  { %v1722_v58 = vpop.f32.mrf.mxu1 }
 0x696   :  { %v1756_v62 = vadd.f32 %v1722_v58, %v1593_v38 }
 0x698   :  { %1772 = vst [vmem:[#allocation16 + $0x38] sm:$0xff] %v1756_v62 }
 0x69d   :  { %v1725_v3 = vpop.f32.mrf.mxu1 }
 0x69e   :  { %v1757_v9 = vadd.f32 %v1725_v3, %v1594_v39 }
 0x6a0   :  { %1773 = vst [vmem:[#allocation16 + $0x40] sm:$0xff] %v1757_v9 }
 0x6a5   :  { %v1728_v45 = vpop.f32.mrf.mxu1 }
 0x6a6   :  { %v1758_v33 = vadd.f32 %v1728_v45, %v1595_v29 }
 0x6a8   :  { %1774 = vst [vmem:[#allocation16 + $0x48] sm:$0xff] %v1758_v33 }
 0x6ad   :  { %v1731_v15 = vpop.f32.mrf.mxu1 }
 0x6ae   :  { %v1759_v48 = vadd.f32 %v1731_v15, %v1596_v20 }
 0x6b0   :  { %1775 = vst [vmem:[#allocation16 + $0x50] sm:$0xff] %v1759_v48 }
 0x6b5   :  { %v1734_v7 = vpop.f32.mrf.mxu1 }
 0x6b6   :  { %v1760_v11 = vadd.f32 %v1734_v7, %v1597_v59 }
 0x6b8   :  { %1776 = vst [vmem:[#allocation16 + $0x58] sm:$0xff] %v1760_v11 }
 0x6bd   :  { %v1737_v21 = vpop.f32.mrf.mxu1 }
 0x6be   :  { %v1761_v63 = vadd.f32 %v1737_v21, %v1598_v10 }
 0x6c0   :  { %1777 = vst [vmem:[#allocation16 + $0x60] sm:$0xff] %v1761_v63 }
 0x6c5   :  { %v1740_v18 = vpop.f32.mrf.mxu1 }
 0x6c6   :  { %v1762_v41 = vadd.f32 %v1740_v18, %v1599_v36 }
 0x6c8   :  { %1778 = vst [vmem:[#allocation16 + $0x68] sm:$0xff] %v1762_v41 }
 0x6cd   :  { %v1743_v25 = vpop.f32.mrf.mxu1 }
 0x6ce   :  { %v1763_v26 = vadd.f32 %v1743_v25, %v1600_v30 }
 0x6d0   :  { %1779 = vst [vmem:[#allocation16 + $0x70] sm:$0xff] %v1763_v26 }
 0x6d5   :  { %v1746_v24 = vpop.f32.mrf.mxu1 }
 0x6d6   :  { %v1764_v27 = vadd.f32 %v1746_v24, %v1601_v50 }
 0x6d8   :  { %1780 = vst [vmem:[#allocation16 + $0x78] sm:$0xff] %v1764_v27 }
 0x6d9   :  { %1793 = dma.vmem_to_hbm [thread:$0]  %s1786_s3, 2048, %s1788_s21, [#allocation4], %s2124_s13, %s2124_s13, %s2125_s14  }
 0x6da   :  { %2121 = dma.done.wait [#allocation4], 2048  }
 0x6db   :  { %2122 = vsyncadd [#allocation4], 4294965248 }
 0x6dc   :  { %1798 = vsyncpa [#allocation3], 1 }
 0x6dd   :  { %1799 = vsyncpa [#allocation6], 1 }
 0x6de   :  { %1800 = vsyncpa [#allocation9], 1 }
 0x6df   :  { %1801 = vsyncpa [#allocation12], 1 }
 0x6e0   :  { %1802 = vsyncpa [#allocation15], 1 }
 0x6e1   :  { %1803 = vsyncpa [#allocation4], 1 }

</bundles_post_ra>
